<compile_context>
chip_gen: v5e
topology: v5e:2x2
jax: 0.10.0
libtpu: 0.0.40
codegen_flags: <defaults>
</compile_context>

<pallas_src>
import math
import jax
import jax.numpy as jnp
from jax.experimental import pallas as pl
from jax.experimental.pallas import tpu as pltpu

# scaled-down hyperparameters consistent with the module's forward
B, S, D = 2, 8, 32          # batch, max_seq_len, d_model
NHEAD = 2
HD = D // NHEAD
DHID = 64                   # dim_feedforward
NLAYERS = 2
EPS = 1e-5                  # nn.LayerNorm default
NEG_INF = -1e30             # additive mask value for masked attention entries
BS = B * S

# ----------------------------------------------------------------------------
# Packed-parameter layout: one (PACK_R, 128) f32 buffer, static row offsets.
# ----------------------------------------------------------------------------
PACK_W = 128                # lane width


def _build_layout():
    layout = {}
    row = 0

    def add(name, nr, nc):
        nonlocal row
        layout[name] = (row, (nr, nc))
        row += nr

    for l in range(NLAYERS):
        add(f'wt_in{l}', D, 3 * D)      # MHA in_proj  (x @ W form)
        add(f'wt_out{l}', D, D)         # MHA out_proj
        add(f'wt1{l}', D, DHID)         # linear1
        add(f'wt2{l}', DHID, D)         # linear2
        add(f'b_in{l}', 1, 3 * D)
        add(f'b_out{l}', 1, D)
        add(f'b1{l}', 1, DHID)
        add(f'b2{l}', 1, D)
        add(f'ln1w{l}', 1, D)
        add(f'ln1b{l}', 1, D)
        add(f'ln2w{l}', 1, D)
        add(f'ln2b{l}', 1, D)
    add('lnfw', 1, D)                   # self.layerNorm
    add('lnfb', 1, D)
    add('w_head', 1, D)                 # self.linear weight (PyTorch (1, D) row)
    add('b_head', 1, 1)
    return layout, ((row + 7) // 8) * 8


LAYOUT, PACK_R = _build_layout()


# ----------------------------------------------------------------------------
# Shared forward math (used by the kernel body AND the pure-JAX reference).
# ----------------------------------------------------------------------------
def _mm(a, b):
    """2-D matmul on the MXU: bf16 operands, f32 accumulation."""
    return jnp.dot(a.astype(jnp.bfloat16), b.astype(jnp.bfloat16),
                   preferred_element_type=jnp.float32)


def _layernorm(x, w, b):
    mu = jnp.mean(x, axis=-1, keepdims=True)
    var = jnp.mean((x - mu) ** 2, axis=-1, keepdims=True)
    return (x - mu) * jax.lax.rsqrt(var + EPS) * w + b


def _forward_math(x2d, mask_neg, getp):
    """x2d: (B*S, D) f32 (batch folded into rows); mask_neg: (B, S) f32 with 0.0
    for real tokens / NEG_INF for padded tokens; getp(name) -> 2-D param array."""
    scale = 1.0 / math.sqrt(HD)
    # attn_mask = pad[:,None,:] | pad[:,:,None]  -> additive -inf bias, built here.
    bias = jnp.minimum(mask_neg[:, :, None], mask_neg[:, None, :])        # (B,S,S)

    for l in range(NLAYERS):                                              # unrolled
        # ---- multi-head self-attention (post-norm residual block) ----
        qkv = _mm(x2d, getp(f'wt_in{l}')) + getp(f'b_in{l}')              # (BS,3D)
        qkv3 = qkv.reshape(B, S, 3 * D)
        wt_out = getp(f'wt_out{l}')                                       # (D, D)
        attn2d = jnp.zeros((BS, D), jnp.float32)
        for h in range(NHEAD):                                            # unrolled
            qh = qkv3[:, :, h * HD:(h + 1) * HD] * scale                  # (B,S,HD)
            kh = qkv3[:, :, D + h * HD:D + (h + 1) * HD]
            vh = qkv3[:, :, 2 * D + h * HD:2 * D + (h + 1) * HD]
            s = jnp.einsum('bqh,bkh->bqk',
                           qh.astype(jnp.bfloat16), kh.astype(jnp.bfloat16),
                           preferred_element_type=jnp.float32) + bias     # (B,S,S)
            s = s - jnp.max(s, axis=-1, keepdims=True)
            e = jnp.exp(s)
            p = e / jnp.sum(e, axis=-1, keepdims=True)
            ctx = jnp.einsum('bqk,bkh->bqh',
                             p.astype(jnp.bfloat16), vh.astype(jnp.bfloat16),
                             preferred_element_type=jnp.float32)          # (B,S,HD)
            # Accumulate through this head's slice of the out-projection
            # (equivalent to concat(heads) @ wt_out, without the concat).
            attn2d = attn2d + _mm(ctx.reshape(BS, HD),
                                  wt_out[h * HD:(h + 1) * HD, :])
        attn2d = attn2d + getp(f'b_out{l}')
        x2d = _layernorm(x2d + attn2d, getp(f'ln1w{l}'), getp(f'ln1b{l}'))

        # ---- feed-forward block (ReLU) ----
        h1 = jnp.maximum(_mm(x2d, getp(f'wt1{l}')) + getp(f'b1{l}'), 0.0)
        ff = _mm(h1, getp(f'wt2{l}')) + getp(f'b2{l}')
        x2d = _layernorm(x2d + ff, getp(f'ln2w{l}'), getp(f'ln2b{l}'))

    # Encoder's final norm, then the explicit extra self.layerNorm in forward().
    # Intentionally applied twice — matches the source module; do not deduplicate.
    lnfw, lnfb = getp('lnfw'), getp('lnfb')
    x2d = _layernorm(x2d, lnfw, lnfb)
    x2d = _layernorm(x2d, lnfw, lnfb)

    # Head: Linear(D, 1) -> per-sequence standardization (ddof=1) -> Sigmoid.
    # Computed as a lane reduction so the result is lane-dense (B, S).
    w_head = getp('w_head')                                               # (1, D)
    b_head = getp('b_head')                                               # (1, 1)
    x3 = x2d.reshape(B, S, D)
    y = jnp.sum(x3 * w_head[None, :, :], axis=-1) + b_head                # (B, S)
    mean = jnp.mean(y, axis=1, keepdims=True)                             # (B, 1)
    var = jnp.sum((y - mean) ** 2, axis=1, keepdims=True) / (S - 1)       # ddof=1
    return jax.nn.sigmoid((y - mean) * jax.lax.rsqrt(var))                # (B, S)


# ----------------------------------------------------------------------------
# Pallas kernel + wrapper
# ----------------------------------------------------------------------------
def transformer_kernel(x_ref, mask_ref, pk_ref, out_ref):
    def getp(name):
        row, (nr, nc) = LAYOUT[name]
        return pk_ref[row:row + nr, 0:nc]     # static slice -> single VMEM load
    out_ref[...] = _forward_math(x_ref[...], mask_ref[...], getp)


def transformer_forward(x, pad_mask, packed_params):
    x2d = x.reshape(BS, D)                                   # fold batch into M
    mask_neg = jnp.where(pad_mask, jnp.float32(NEG_INF), jnp.float32(0.0))

    mm_flops = 2 * BS * NLAYERS * (D * 3 * D + D * D + 2 * D * DHID)
    attn_flops = NLAYERS * NHEAD * 4 * B * S * S * HD
    cost = pl.CostEstimate(
        flops=mm_flops + attn_flops,
        transcendentals=NLAYERS * NHEAD * B * S * S + B * S,
        bytes_accessed=4 * (PACK_R * PACK_W + BS * D + 2 * B * S))

    # Single invocation (no grid): 3 input DMAs (tokens, pad mask, packed params),
    # 1 lane-dense output DMA.  All whole-array blocks live in VMEM.
    return pl.pallas_call(
        transformer_kernel,
        out_shape=jax.ShapeDtypeStruct((B, S), jnp.float32),
        cost_estimate=cost,
        compiler_params=pltpu.CompilerParams(vmem_limit_bytes=32 * 1024 * 1024),
    )(x2d, mask_neg, packed_params)


def reference_forward(x, pad_mask, params):
    x2d = x.reshape(BS, D)
    mask_neg = jnp.where(pad_mask, jnp.float32(NEG_INF), jnp.float32(0.0))
    return _forward_math(x2d, mask_neg, lambda name: params[name])


# ----------------------------------------------------------------------------
# Parameter construction / packing
# ----------------------------------------------------------------------------
def init_params(key):
    ks = iter(jax.random.split(key, 32))

    def nrm(shape, scale):
        return (scale * jax.random.normal(next(ks), shape)).astype(jnp.float32)

    p = {}
    for l in range(NLAYERS):
        # PyTorch-style (out_features, in_features) weights, transposed ONCE here
        # so the kernel only ever computes `x @ W`.
        p[f'wt_in{l}'] = nrm((3 * D, D), 0.1).T          # MHA in_proj -> (D, 3D)
        p[f'b_in{l}'] = nrm((1, 3 * D), 0.05)
        p[f'wt_out{l}'] = nrm((D, D), 0.1).T             # MHA out_proj -> (D, D)
        p[f'b_out{l}'] = nrm((1, D), 0.05)
        p[f'wt1{l}'] = nrm((DHID, D), 0.1).T             # linear1 -> (D, DHID)
        p[f'b1{l}'] = nrm((1, DHID), 0.05)
        p[f'wt2{l}'] = nrm((D, DHID), 0.1).T             # linear2 -> (DHID, D)
        p[f'b2{l}'] = nrm((1, D), 0.05)
        p[f'ln1w{l}'] = 1.0 + nrm((1, D), 0.05)
        p[f'ln1b{l}'] = nrm((1, D), 0.05)
        p[f'ln2w{l}'] = 1.0 + nrm((1, D), 0.05)
        p[f'ln2b{l}'] = nrm((1, D), 0.05)
    p['lnfw'] = 1.0 + nrm((1, D), 0.05)                  # self.layerNorm
    p['lnfb'] = nrm((1, D), 0.05)
    # init_linear_weights(): xavier_normal_ weight, bias filled with 1.0
    p['w_head'] = nrm((1, D), math.sqrt(2.0 / (1 + D)))
    p['b_head'] = jnp.ones((1, 1), jnp.float32)
    return p


def pack_params(params):
    """Pack all parameters into one (PACK_R, 128) f32 buffer -> one parameter DMA."""
    buf = jnp.zeros((PACK_R, PACK_W), jnp.float32)
    for name, (row, (nr, nc)) in LAYOUT.items():
        buf = buf.at[row:row + nr, 0:nc].set(
            params[name].astype(jnp.float32).reshape(nr, nc))
    return buf


if __name__ == "__main__":
    key = jax.random.PRNGKey(0)
    kx, kp = jax.random.split(key)
    x = jax.random.normal(kx, (B, S, D), jnp.float32)
    # No padded tokens: the module's mask construction fully masks the attention
    # rows of padded tokens, which yields NaN softmax rows in PyTorch too.
    pad_mask = jnp.zeros((B, S), dtype=bool)
    params = init_params(kp)
    packed = pack_params(params)

    out = jax.block_until_ready(transformer_forward(x, pad_mask, packed))
    ref = jax.block_until_ready(reference_forward(x, pad_mask, params))

    assert out.shape == (B, S), out.shape
    assert bool(jnp.all(jnp.isfinite(out)))
    max_err = float(jnp.max(jnp.abs(out - ref)))
    assert max_err < 5e-2, f"max abs err {max_err}"
    print("KERNEL_OK")
</pallas_src>

<mosaic_0001>
module attributes {stable_mosaic.version = 11 : i64} {
  func.func @transformer_kernel(%arg0: memref<16x32xf32, #tpu.memory_space<vmem>>, %arg1: memref<2x8xf32, #tpu.memory_space<vmem>>, %arg2: memref<344x128xf32, #tpu.memory_space<vmem>>, %arg3: memref<2x8xf32, #tpu.memory_space<vmem>>) attributes {dimension_semantics = [], scalar_prefetch = 0 : i64, scratch_operands = 0 : i64, tpu.core_type = #tpu.core_type<tc>} {
    %c0 = arith.constant 0 : index
    %c0_0 = arith.constant 0 : index
    %0 = vector.load %arg0[%c0, %c0_0] : memref<16x32xf32, #tpu.memory_space<vmem>>, vector<16x32xf32>
    %c0_1 = arith.constant 0 : index
    %c0_2 = arith.constant 0 : index
    %1 = vector.load %arg1[%c0_1, %c0_2] : memref<2x8xf32, #tpu.memory_space<vmem>>, vector<2x8xf32>
    %2 = vector.shape_cast %1 : vector<2x8xf32> to vector<2x8x1xf32>
    %3 = vector.shape_cast %1 : vector<2x8xf32> to vector<2x1x8xf32>
    %4 = vector.broadcast %2 : vector<2x8x1xf32> to vector<2x8x8xf32>
    %5 = vector.broadcast %3 : vector<2x1x8xf32> to vector<2x8x8xf32>
    %6 = arith.minimumf %4, %5 : vector<2x8x8xf32>
    %c0_3 = arith.constant 0 : index
    %c0_4 = arith.constant 0 : index
    %7 = vector.load %arg2[%c0_3, %c0_4] : memref<344x128xf32, #tpu.memory_space<vmem>>, vector<32x96xf32>
    %8 = arith.truncf %0 : vector<16x32xf32> to vector<16x32xbf16>
    %9 = arith.truncf %7 : vector<32x96xf32> to vector<32x96xbf16>
    %cst = arith.constant dense<0.000000e+00> : vector<16x96xf32>
    %10 = tpu.matmul %8, %9, %cst {dimension_numbers = #tpu.dot_dimension_numbers<[1], [0], [0], [1], [0, 0, 1, 1], [], []>} : vector<16x32xbf16>, vector<32x96xbf16>, vector<16x96xf32> -> vector<16x96xf32>
    %c160 = arith.constant 160 : index
    %c0_5 = arith.constant 0 : index
    %11 = vector.load %arg2[%c160, %c0_5] : memref<344x128xf32, #tpu.memory_space<vmem>>, vector<1x96xf32>
    %12 = vector.broadcast %11 : vector<1x96xf32> to vector<16x96xf32>
    %13 = arith.addf %10, %12 : vector<16x96xf32>
    %14 = vector.shape_cast %13 : vector<16x96xf32> to vector<2x8x96xf32>
    %c32 = arith.constant 32 : index
    %c0_6 = arith.constant 0 : index
    %15 = vector.load %arg2[%c32, %c0_6] : memref<344x128xf32, #tpu.memory_space<vmem>>, vector<32x32xf32>
    %cst_7 = arith.constant 0.000000e+00 : f32
    %16 = vector.broadcast %cst_7 : f32 to vector<16x32xf32>
    %17 = vector.extract_strided_slice %14 {offsets = [0, 0, 0], sizes = [2, 8, 16], strides = [1, 1, 1]} : vector<2x8x96xf32> to vector<2x8x16xf32>
    %cst_8 = arith.constant 2.500000e-01 : f32
    %18 = vector.broadcast %cst_8 : f32 to vector<2x8x16xf32>
    %19 = arith.mulf %17, %18 : vector<2x8x16xf32>
    %20 = vector.extract_strided_slice %14 {offsets = [0, 0, 32], sizes = [2, 8, 16], strides = [1, 1, 1]} : vector<2x8x96xf32> to vector<2x8x16xf32>
    %21 = vector.extract_strided_slice %14 {offsets = [0, 0, 64], sizes = [2, 8, 16], strides = [1, 1, 1]} : vector<2x8x96xf32> to vector<2x8x16xf32>
    %22 = arith.truncf %19 : vector<2x8x16xf32> to vector<2x8x16xbf16>
    %23 = arith.truncf %20 : vector<2x8x16xf32> to vector<2x8x16xbf16>
    "tpu.trace_start"() <{level = 10 : i32, message = "bqh,bkh->bqk"}> : () -> ()
    %cst_9 = arith.constant dense<0.000000e+00> : vector<2x8x8xf32>
    %24 = tpu.matmul %22, %23, %cst_9 {dimension_numbers = #tpu.dot_dimension_numbers<[2], [2], [1], [1], [0, 0, 0, 1, 1, 1], [0], [0]>} : vector<2x8x16xbf16>, vector<2x8x16xbf16>, vector<2x8x8xf32> -> vector<2x8x8xf32>
    "tpu.trace_stop"() : () -> ()
    %25 = arith.addf %24, %6 : vector<2x8x8xf32>
    %cst_10 = arith.constant dense<0xFF800000> : vector<2x8xf32>
    %26 = vector.multi_reduction <maximumf>, %25, %cst_10 [2] : vector<2x8x8xf32> to vector<2x8xf32>
    %27 = vector.shape_cast %26 : vector<2x8xf32> to vector<2x8x1xf32>
    %28 = vector.broadcast %27 : vector<2x8x1xf32> to vector<2x8x8xf32>
    %29 = arith.subf %25, %28 : vector<2x8x8xf32>
    %30 = math.exp %29 : vector<2x8x8xf32>
    %cst_11 = arith.constant dense<0.000000e+00> : vector<2x8xf32>
    %31 = vector.multi_reduction <add>, %30, %cst_11 [2] : vector<2x8x8xf32> to vector<2x8xf32>
    %32 = vector.shape_cast %31 : vector<2x8xf32> to vector<2x8x1xf32>
    %33 = vector.broadcast %32 : vector<2x8x1xf32> to vector<2x8x8xf32>
    %34 = arith.divf %30, %33 : vector<2x8x8xf32>
    %35 = arith.truncf %34 : vector<2x8x8xf32> to vector<2x8x8xbf16>
    %36 = arith.truncf %21 : vector<2x8x16xf32> to vector<2x8x16xbf16>
    "tpu.trace_start"() <{level = 10 : i32, message = "bqk,bkh->bqh"}> : () -> ()
    %cst_12 = arith.constant dense<0.000000e+00> : vector<2x8x16xf32>
    %37 = tpu.matmul %35, %36, %cst_12 {dimension_numbers = #tpu.dot_dimension_numbers<[2], [1], [1], [2], [0, 0, 0, 1, 1, 2], [0], [0]>} : vector<2x8x8xbf16>, vector<2x8x16xbf16>, vector<2x8x16xf32> -> vector<2x8x16xf32>
    "tpu.trace_stop"() : () -> ()
    %38 = vector.shape_cast %37 : vector<2x8x16xf32> to vector<16x16xf32>
    %39 = vector.extract_strided_slice %15 {offsets = [0, 0], sizes = [16, 32], strides = [1, 1]} : vector<32x32xf32> to vector<16x32xf32>
    %40 = arith.truncf %38 : vector<16x16xf32> to vector<16x16xbf16>
    %41 = arith.truncf %39 : vector<16x32xf32> to vector<16x32xbf16>
    %cst_13 = arith.constant dense<0.000000e+00> : vector<16x32xf32>
    %42 = tpu.matmul %40, %41, %cst_13 {dimension_numbers = #tpu.dot_dimension_numbers<[1], [0], [0], [1], [0, 0, 1, 1], [], []>} : vector<16x16xbf16>, vector<16x32xbf16>, vector<16x32xf32> -> vector<16x32xf32>
    %43 = arith.addf %16, %42 : vector<16x32xf32>
    %44 = vector.extract_strided_slice %14 {offsets = [0, 0, 16], sizes = [2, 8, 16], strides = [1, 1, 1]} : vector<2x8x96xf32> to vector<2x8x16xf32>
    %cst_14 = arith.constant 2.500000e-01 : f32
    %45 = vector.broadcast %cst_14 : f32 to vector<2x8x16xf32>
    %46 = arith.mulf %44, %45 : vector<2x8x16xf32>
    %47 = vector.extract_strided_slice %14 {offsets = [0, 0, 48], sizes = [2, 8, 16], strides = [1, 1, 1]} : vector<2x8x96xf32> to vector<2x8x16xf32>
    %48 = vector.extract_strided_slice %14 {offsets = [0, 0, 80], sizes = [2, 8, 16], strides = [1, 1, 1]} : vector<2x8x96xf32> to vector<2x8x16xf32>
    %49 = arith.truncf %46 : vector<2x8x16xf32> to vector<2x8x16xbf16>
    %50 = arith.truncf %47 : vector<2x8x16xf32> to vector<2x8x16xbf16>
    "tpu.trace_start"() <{level = 10 : i32, message = "bqh,bkh->bqk"}> : () -> ()
    %cst_15 = arith.constant dense<0.000000e+00> : vector<2x8x8xf32>
    %51 = tpu.matmul %49, %50, %cst_15 {dimension_numbers = #tpu.dot_dimension_numbers<[2], [2], [1], [1], [0, 0, 0, 1, 1, 1], [0], [0]>} : vector<2x8x16xbf16>, vector<2x8x16xbf16>, vector<2x8x8xf32> -> vector<2x8x8xf32>
    "tpu.trace_stop"() : () -> ()
    %52 = arith.addf %51, %6 : vector<2x8x8xf32>
    %cst_16 = arith.constant dense<0xFF800000> : vector<2x8xf32>
    %53 = vector.multi_reduction <maximumf>, %52, %cst_16 [2] : vector<2x8x8xf32> to vector<2x8xf32>
    %54 = vector.shape_cast %53 : vector<2x8xf32> to vector<2x8x1xf32>
    %55 = vector.broadcast %54 : vector<2x8x1xf32> to vector<2x8x8xf32>
    %56 = arith.subf %52, %55 : vector<2x8x8xf32>
    %57 = math.exp %56 : vector<2x8x8xf32>
    %cst_17 = arith.constant dense<0.000000e+00> : vector<2x8xf32>
    %58 = vector.multi_reduction <add>, %57, %cst_17 [2] : vector<2x8x8xf32> to vector<2x8xf32>
    %59 = vector.shape_cast %58 : vector<2x8xf32> to vector<2x8x1xf32>
    %60 = vector.broadcast %59 : vector<2x8x1xf32> to vector<2x8x8xf32>
    %61 = arith.divf %57, %60 : vector<2x8x8xf32>
    %62 = arith.truncf %61 : vector<2x8x8xf32> to vector<2x8x8xbf16>
    %63 = arith.truncf %48 : vector<2x8x16xf32> to vector<2x8x16xbf16>
    "tpu.trace_start"() <{level = 10 : i32, message = "bqk,bkh->bqh"}> : () -> ()
    %cst_18 = arith.constant dense<0.000000e+00> : vector<2x8x16xf32>
    %64 = tpu.matmul %62, %63, %cst_18 {dimension_numbers = #tpu.dot_dimension_numbers<[2], [1], [1], [2], [0, 0, 0, 1, 1, 2], [0], [0]>} : vector<2x8x8xbf16>, vector<2x8x16xbf16>, vector<2x8x16xf32> -> vector<2x8x16xf32>
    "tpu.trace_stop"() : () -> ()
    %65 = vector.shape_cast %64 : vector<2x8x16xf32> to vector<16x16xf32>
    %66 = vector.extract_strided_slice %15 {offsets = [16, 0], sizes = [16, 32], strides = [1, 1]} : vector<32x32xf32> to vector<16x32xf32>
    %67 = arith.truncf %65 : vector<16x16xf32> to vector<16x16xbf16>
    %68 = arith.truncf %66 : vector<16x32xf32> to vector<16x32xbf16>
    %cst_19 = arith.constant dense<0.000000e+00> : vector<16x32xf32>
    %69 = tpu.matmul %67, %68, %cst_19 {dimension_numbers = #tpu.dot_dimension_numbers<[1], [0], [0], [1], [0, 0, 1, 1], [], []>} : vector<16x16xbf16>, vector<16x32xbf16>, vector<16x32xf32> -> vector<16x32xf32>
    %70 = arith.addf %43, %69 : vector<16x32xf32>
    %c161 = arith.constant 161 : index
    %c0_20 = arith.constant 0 : index
    %71 = vector.load %arg2[%c161, %c0_20] : memref<344x128xf32, #tpu.memory_space<vmem>>, vector<1x32xf32>
    %72 = vector.broadcast %71 : vector<1x32xf32> to vector<16x32xf32>
    %73 = arith.addf %70, %72 : vector<16x32xf32>
    %74 = arith.addf %0, %73 : vector<16x32xf32>
    %c164 = arith.constant 164 : index
    %c0_21 = arith.constant 0 : index
    %75 = vector.load %arg2[%c164, %c0_21] : memref<344x128xf32, #tpu.memory_space<vmem>>, vector<1x32xf32>
    %c165 = arith.constant 165 : index
    %c0_22 = arith.constant 0 : index
    %76 = vector.load %arg2[%c165, %c0_22] : memref<344x128xf32, #tpu.memory_space<vmem>>, vector<1x32xf32>
    %cst_23 = arith.constant dense<0.000000e+00> : vector<16xf32>
    %77 = vector.multi_reduction <add>, %74, %cst_23 [1] : vector<16x32xf32> to vector<16xf32>
    %78 = vector.shape_cast %77 : vector<16xf32> to vector<16x1xf32>
    %cst_24 = arith.constant 3.200000e+01 : f32
    %79 = vector.broadcast %cst_24 : f32 to vector<16x1xf32>
    %80 = arith.divf %78, %79 : vector<16x1xf32>
    %81 = vector.broadcast %80 : vector<16x1xf32> to vector<16x32xf32>
    %82 = arith.subf %74, %81 : vector<16x32xf32>
    %83 = arith.mulf %82, %82 : vector<16x32xf32>
    %cst_25 = arith.constant dense<0.000000e+00> : vector<16xf32>
    %84 = vector.multi_reduction <add>, %83, %cst_25 [1] : vector<16x32xf32> to vector<16xf32>
    %85 = vector.shape_cast %84 : vector<16xf32> to vector<16x1xf32>
    %cst_26 = arith.constant 3.200000e+01 : f32
    %86 = vector.broadcast %cst_26 : f32 to vector<16x1xf32>
    %87 = arith.divf %85, %86 : vector<16x1xf32>
    %88 = vector.broadcast %80 : vector<16x1xf32> to vector<16x32xf32>
    %89 = arith.subf %74, %88 : vector<16x32xf32>
    %cst_27 = arith.constant 9.99999974E-6 : f32
    %90 = vector.broadcast %cst_27 : f32 to vector<16x1xf32>
    %91 = arith.addf %87, %90 : vector<16x1xf32>
    %92 = math.rsqrt %91 : vector<16x1xf32>
    %93 = vector.broadcast %92 : vector<16x1xf32> to vector<16x32xf32>
    %94 = arith.mulf %89, %93 : vector<16x32xf32>
    %95 = vector.broadcast %75 : vector<1x32xf32> to vector<16x32xf32>
    %96 = arith.mulf %94, %95 : vector<16x32xf32>
    %97 = vector.broadcast %76 : vector<1x32xf32> to vector<16x32xf32>
    %98 = arith.addf %96, %97 : vector<16x32xf32>
    %c64 = arith.constant 64 : index
    %c0_28 = arith.constant 0 : index
    %99 = vector.load %arg2[%c64, %c0_28] : memref<344x128xf32, #tpu.memory_space<vmem>>, vector<32x64xf32>
    %100 = arith.truncf %98 : vector<16x32xf32> to vector<16x32xbf16>
    %101 = arith.truncf %99 : vector<32x64xf32> to vector<32x64xbf16>
    %cst_29 = arith.constant dense<0.000000e+00> : vector<16x64xf32>
    %102 = tpu.matmul %100, %101, %cst_29 {dimension_numbers = #tpu.dot_dimension_numbers<[1], [0], [0], [1], [0, 0, 1, 1], [], []>} : vector<16x32xbf16>, vector<32x64xbf16>, vector<16x64xf32> -> vector<16x64xf32>
    %c162 = arith.constant 162 : index
    %c0_30 = arith.constant 0 : index
    %103 = vector.load %arg2[%c162, %c0_30] : memref<344x128xf32, #tpu.memory_space<vmem>>, vector<1x64xf32>
    %104 = vector.broadcast %103 : vector<1x64xf32> to vector<16x64xf32>
    %105 = arith.addf %102, %104 : vector<16x64xf32>
    %cst_31 = arith.constant 0.000000e+00 : f32
    %106 = vector.broadcast %cst_31 : f32 to vector<16x64xf32>
    %107 = arith.maximumf %105, %106 : vector<16x64xf32>
    %c96 = arith.constant 96 : index
    %c0_32 = arith.constant 0 : index
    %108 = vector.load %arg2[%c96, %c0_32] : memref<344x128xf32, #tpu.memory_space<vmem>>, vector<64x32xf32>
    %109 = arith.truncf %107 : vector<16x64xf32> to vector<16x64xbf16>
    %110 = arith.truncf %108 : vector<64x32xf32> to vector<64x32xbf16>
    %cst_33 = arith.constant dense<0.000000e+00> : vector<16x32xf32>
    %111 = tpu.matmul %109, %110, %cst_33 {dimension_numbers = #tpu.dot_dimension_numbers<[1], [0], [0], [1], [0, 0, 1, 1], [], []>} : vector<16x64xbf16>, vector<64x32xbf16>, vector<16x32xf32> -> vector<16x32xf32>
    %c163 = arith.constant 163 : index
    %c0_34 = arith.constant 0 : index
    %112 = vector.load %arg2[%c163, %c0_34] : memref<344x128xf32, #tpu.memory_space<vmem>>, vector<1x32xf32>
    %113 = vector.broadcast %112 : vector<1x32xf32> to vector<16x32xf32>
    %114 = arith.addf %111, %113 : vector<16x32xf32>
    %115 = arith.addf %98, %114 : vector<16x32xf32>
    %c166 = arith.constant 166 : index
    %c0_35 = arith.constant 0 : index
    %116 = vector.load %arg2[%c166, %c0_35] : memref<344x128xf32, #tpu.memory_space<vmem>>, vector<1x32xf32>
    %c167 = arith.constant 167 : index
    %c0_36 = arith.constant 0 : index
    %117 = vector.load %arg2[%c167, %c0_36] : memref<344x128xf32, #tpu.memory_space<vmem>>, vector<1x32xf32>
    %cst_37 = arith.constant dense<0.000000e+00> : vector<16xf32>
    %118 = vector.multi_reduction <add>, %115, %cst_37 [1] : vector<16x32xf32> to vector<16xf32>
    %119 = vector.shape_cast %118 : vector<16xf32> to vector<16x1xf32>
    %cst_38 = arith.constant 3.200000e+01 : f32
    %120 = vector.broadcast %cst_38 : f32 to vector<16x1xf32>
    %121 = arith.divf %119, %120 : vector<16x1xf32>
    %122 = vector.broadcast %121 : vector<16x1xf32> to vector<16x32xf32>
    %123 = arith.subf %115, %122 : vector<16x32xf32>
    %124 = arith.mulf %123, %123 : vector<16x32xf32>
    %cst_39 = arith.constant dense<0.000000e+00> : vector<16xf32>
    %125 = vector.multi_reduction <add>, %124, %cst_39 [1] : vector<16x32xf32> to vector<16xf32>
    %126 = vector.shape_cast %125 : vector<16xf32> to vector<16x1xf32>
    %cst_40 = arith.constant 3.200000e+01 : f32
    %127 = vector.broadcast %cst_40 : f32 to vector<16x1xf32>
    %128 = arith.divf %126, %127 : vector<16x1xf32>
    %129 = vector.broadcast %121 : vector<16x1xf32> to vector<16x32xf32>
    %130 = arith.subf %115, %129 : vector<16x32xf32>
    %cst_41 = arith.constant 9.99999974E-6 : f32
    %131 = vector.broadcast %cst_41 : f32 to vector<16x1xf32>
    %132 = arith.addf %128, %131 : vector<16x1xf32>
    %133 = math.rsqrt %132 : vector<16x1xf32>
    %134 = vector.broadcast %133 : vector<16x1xf32> to vector<16x32xf32>
    %135 = arith.mulf %130, %134 : vector<16x32xf32>
    %136 = vector.broadcast %116 : vector<1x32xf32> to vector<16x32xf32>
    %137 = arith.mulf %135, %136 : vector<16x32xf32>
    %138 = vector.broadcast %117 : vector<1x32xf32> to vector<16x32xf32>
    %139 = arith.addf %137, %138 : vector<16x32xf32>
    %c168 = arith.constant 168 : index
    %c0_42 = arith.constant 0 : index
    %140 = vector.load %arg2[%c168, %c0_42] : memref<344x128xf32, #tpu.memory_space<vmem>>, vector<32x96xf32>
    %141 = arith.truncf %139 : vector<16x32xf32> to vector<16x32xbf16>
    %142 = arith.truncf %140 : vector<32x96xf32> to vector<32x96xbf16>
    %cst_43 = arith.constant dense<0.000000e+00> : vector<16x96xf32>
    %143 = tpu.matmul %141, %142, %cst_43 {dimension_numbers = #tpu.dot_dimension_numbers<[1], [0], [0], [1], [0, 0, 1, 1], [], []>} : vector<16x32xbf16>, vector<32x96xbf16>, vector<16x96xf32> -> vector<16x96xf32>
    %c328 = arith.constant 328 : index
    %c0_44 = arith.constant 0 : index
    %144 = vector.load %arg2[%c328, %c0_44] : memref<344x128xf32, #tpu.memory_space<vmem>>, vector<1x96xf32>
    %145 = vector.broadcast %144 : vector<1x96xf32> to vector<16x96xf32>
    %146 = arith.addf %143, %145 : vector<16x96xf32>
    %147 = vector.shape_cast %146 : vector<16x96xf32> to vector<2x8x96xf32>
    %c200 = arith.constant 200 : index
    %c0_45 = arith.constant 0 : index
    %148 = vector.load %arg2[%c200, %c0_45] : memref<344x128xf32, #tpu.memory_space<vmem>>, vector<32x32xf32>
    %cst_46 = arith.constant 0.000000e+00 : f32
    %149 = vector.broadcast %cst_46 : f32 to vector<16x32xf32>
    %150 = vector.extract_strided_slice %147 {offsets = [0, 0, 0], sizes = [2, 8, 16], strides = [1, 1, 1]} : vector<2x8x96xf32> to vector<2x8x16xf32>
    %cst_47 = arith.constant 2.500000e-01 : f32
    %151 = vector.broadcast %cst_47 : f32 to vector<2x8x16xf32>
    %152 = arith.mulf %150, %151 : vector<2x8x16xf32>
    %153 = vector.extract_strided_slice %147 {offsets = [0, 0, 32], sizes = [2, 8, 16], strides = [1, 1, 1]} : vector<2x8x96xf32> to vector<2x8x16xf32>
    %154 = vector.extract_strided_slice %147 {offsets = [0, 0, 64], sizes = [2, 8, 16], strides = [1, 1, 1]} : vector<2x8x96xf32> to vector<2x8x16xf32>
    %155 = arith.truncf %152 : vector<2x8x16xf32> to vector<2x8x16xbf16>
    %156 = arith.truncf %153 : vector<2x8x16xf32> to vector<2x8x16xbf16>
    "tpu.trace_start"() <{level = 10 : i32, message = "bqh,bkh->bqk"}> : () -> ()
    %cst_48 = arith.constant dense<0.000000e+00> : vector<2x8x8xf32>
    %157 = tpu.matmul %155, %156, %cst_48 {dimension_numbers = #tpu.dot_dimension_numbers<[2], [2], [1], [1], [0, 0, 0, 1, 1, 1], [0], [0]>} : vector<2x8x16xbf16>, vector<2x8x16xbf16>, vector<2x8x8xf32> -> vector<2x8x8xf32>
    "tpu.trace_stop"() : () -> ()
    %158 = arith.addf %157, %6 : vector<2x8x8xf32>
    %cst_49 = arith.constant dense<0xFF800000> : vector<2x8xf32>
    %159 = vector.multi_reduction <maximumf>, %158, %cst_49 [2] : vector<2x8x8xf32> to vector<2x8xf32>
    %160 = vector.shape_cast %159 : vector<2x8xf32> to vector<2x8x1xf32>
    %161 = vector.broadcast %160 : vector<2x8x1xf32> to vector<2x8x8xf32>
    %162 = arith.subf %158, %161 : vector<2x8x8xf32>
    %163 = math.exp %162 : vector<2x8x8xf32>
    %cst_50 = arith.constant dense<0.000000e+00> : vector<2x8xf32>
    %164 = vector.multi_reduction <add>, %163, %cst_50 [2] : vector<2x8x8xf32> to vector<2x8xf32>
    %165 = vector.shape_cast %164 : vector<2x8xf32> to vector<2x8x1xf32>
    %166 = vector.broadcast %165 : vector<2x8x1xf32> to vector<2x8x8xf32>
    %167 = arith.divf %163, %166 : vector<2x8x8xf32>
    %168 = arith.truncf %167 : vector<2x8x8xf32> to vector<2x8x8xbf16>
    %169 = arith.truncf %154 : vector<2x8x16xf32> to vector<2x8x16xbf16>
    "tpu.trace_start"() <{level = 10 : i32, message = "bqk,bkh->bqh"}> : () -> ()
    %cst_51 = arith.constant dense<0.000000e+00> : vector<2x8x16xf32>
    %170 = tpu.matmul %168, %169, %cst_51 {dimension_numbers = #tpu.dot_dimension_numbers<[2], [1], [1], [2], [0, 0, 0, 1, 1, 2], [0], [0]>} : vector<2x8x8xbf16>, vector<2x8x16xbf16>, vector<2x8x16xf32> -> vector<2x8x16xf32>
    "tpu.trace_stop"() : () -> ()
    %171 = vector.shape_cast %170 : vector<2x8x16xf32> to vector<16x16xf32>
    %172 = vector.extract_strided_slice %148 {offsets = [0, 0], sizes = [16, 32], strides = [1, 1]} : vector<32x32xf32> to vector<16x32xf32>
    %173 = arith.truncf %171 : vector<16x16xf32> to vector<16x16xbf16>
    %174 = arith.truncf %172 : vector<16x32xf32> to vector<16x32xbf16>
    %cst_52 = arith.constant dense<0.000000e+00> : vector<16x32xf32>
    %175 = tpu.matmul %173, %174, %cst_52 {dimension_numbers = #tpu.dot_dimension_numbers<[1], [0], [0], [1], [0, 0, 1, 1], [], []>} : vector<16x16xbf16>, vector<16x32xbf16>, vector<16x32xf32> -> vector<16x32xf32>
    %176 = arith.addf %149, %175 : vector<16x32xf32>
    %177 = vector.extract_strided_slice %147 {offsets = [0, 0, 16], sizes = [2, 8, 16], strides = [1, 1, 1]} : vector<2x8x96xf32> to vector<2x8x16xf32>
    %cst_53 = arith.constant 2.500000e-01 : f32
    %178 = vector.broadcast %cst_53 : f32 to vector<2x8x16xf32>
    %179 = arith.mulf %177, %178 : vector<2x8x16xf32>
    %180 = vector.extract_strided_slice %147 {offsets = [0, 0, 48], sizes = [2, 8, 16], strides = [1, 1, 1]} : vector<2x8x96xf32> to vector<2x8x16xf32>
    %181 = vector.extract_strided_slice %147 {offsets = [0, 0, 80], sizes = [2, 8, 16], strides = [1, 1, 1]} : vector<2x8x96xf32> to vector<2x8x16xf32>
    %182 = arith.truncf %179 : vector<2x8x16xf32> to vector<2x8x16xbf16>
    %183 = arith.truncf %180 : vector<2x8x16xf32> to vector<2x8x16xbf16>
    "tpu.trace_start"() <{level = 10 : i32, message = "bqh,bkh->bqk"}> : () -> ()
    %cst_54 = arith.constant dense<0.000000e+00> : vector<2x8x8xf32>
    %184 = tpu.matmul %182, %183, %cst_54 {dimension_numbers = #tpu.dot_dimension_numbers<[2], [2], [1], [1], [0, 0, 0, 1, 1, 1], [0], [0]>} : vector<2x8x16xbf16>, vector<2x8x16xbf16>, vector<2x8x8xf32> -> vector<2x8x8xf32>
    "tpu.trace_stop"() : () -> ()
    %185 = arith.addf %184, %6 : vector<2x8x8xf32>
    %cst_55 = arith.constant dense<0xFF800000> : vector<2x8xf32>
    %186 = vector.multi_reduction <maximumf>, %185, %cst_55 [2] : vector<2x8x8xf32> to vector<2x8xf32>
    %187 = vector.shape_cast %186 : vector<2x8xf32> to vector<2x8x1xf32>
    %188 = vector.broadcast %187 : vector<2x8x1xf32> to vector<2x8x8xf32>
    %189 = arith.subf %185, %188 : vector<2x8x8xf32>
    %190 = math.exp %189 : vector<2x8x8xf32>
    %cst_56 = arith.constant dense<0.000000e+00> : vector<2x8xf32>
    %191 = vector.multi_reduction <add>, %190, %cst_56 [2] : vector<2x8x8xf32> to vector<2x8xf32>
    %192 = vector.shape_cast %191 : vector<2x8xf32> to vector<2x8x1xf32>
    %193 = vector.broadcast %192 : vector<2x8x1xf32> to vector<2x8x8xf32>
    %194 = arith.divf %190, %193 : vector<2x8x8xf32>
    %195 = arith.truncf %194 : vector<2x8x8xf32> to vector<2x8x8xbf16>
    %196 = arith.truncf %181 : vector<2x8x16xf32> to vector<2x8x16xbf16>
    "tpu.trace_start"() <{level = 10 : i32, message = "bqk,bkh->bqh"}> : () -> ()
    %cst_57 = arith.constant dense<0.000000e+00> : vector<2x8x16xf32>
    %197 = tpu.matmul %195, %196, %cst_57 {dimension_numbers = #tpu.dot_dimension_numbers<[2], [1], [1], [2], [0, 0, 0, 1, 1, 2], [0], [0]>} : vector<2x8x8xbf16>, vector<2x8x16xbf16>, vector<2x8x16xf32> -> vector<2x8x16xf32>
    "tpu.trace_stop"() : () -> ()
    %198 = vector.shape_cast %197 : vector<2x8x16xf32> to vector<16x16xf32>
    %199 = vector.extract_strided_slice %148 {offsets = [16, 0], sizes = [16, 32], strides = [1, 1]} : vector<32x32xf32> to vector<16x32xf32>
    %200 = arith.truncf %198 : vector<16x16xf32> to vector<16x16xbf16>
    %201 = arith.truncf %199 : vector<16x32xf32> to vector<16x32xbf16>
    %cst_58 = arith.constant dense<0.000000e+00> : vector<16x32xf32>
    %202 = tpu.matmul %200, %201, %cst_58 {dimension_numbers = #tpu.dot_dimension_numbers<[1], [0], [0], [1], [0, 0, 1, 1], [], []>} : vector<16x16xbf16>, vector<16x32xbf16>, vector<16x32xf32> -> vector<16x32xf32>
    %203 = arith.addf %176, %202 : vector<16x32xf32>
    %c329 = arith.constant 329 : index
    %c0_59 = arith.constant 0 : index
    %204 = vector.load %arg2[%c329, %c0_59] : memref<344x128xf32, #tpu.memory_space<vmem>>, vector<1x32xf32>
    %205 = vector.broadcast %204 : vector<1x32xf32> to vector<16x32xf32>
    %206 = arith.addf %203, %205 : vector<16x32xf32>
    %207 = arith.addf %139, %206 : vector<16x32xf32>
    %c332 = arith.constant 332 : index
    %c0_60 = arith.constant 0 : index
    %208 = vector.load %arg2[%c332, %c0_60] : memref<344x128xf32, #tpu.memory_space<vmem>>, vector<1x32xf32>
    %c333 = arith.constant 333 : index
    %c0_61 = arith.constant 0 : index
    %209 = vector.load %arg2[%c333, %c0_61] : memref<344x128xf32, #tpu.memory_space<vmem>>, vector<1x32xf32>
    %cst_62 = arith.constant dense<0.000000e+00> : vector<16xf32>
    %210 = vector.multi_reduction <add>, %207, %cst_62 [1] : vector<16x32xf32> to vector<16xf32>
    %211 = vector.shape_cast %210 : vector<16xf32> to vector<16x1xf32>
    %cst_63 = arith.constant 3.200000e+01 : f32
    %212 = vector.broadcast %cst_63 : f32 to vector<16x1xf32>
    %213 = arith.divf %211, %212 : vector<16x1xf32>
    %214 = vector.broadcast %213 : vector<16x1xf32> to vector<16x32xf32>
    %215 = arith.subf %207, %214 : vector<16x32xf32>
    %216 = arith.mulf %215, %215 : vector<16x32xf32>
    %cst_64 = arith.constant dense<0.000000e+00> : vector<16xf32>
    %217 = vector.multi_reduction <add>, %216, %cst_64 [1] : vector<16x32xf32> to vector<16xf32>
    %218 = vector.shape_cast %217 : vector<16xf32> to vector<16x1xf32>
    %cst_65 = arith.constant 3.200000e+01 : f32
    %219 = vector.broadcast %cst_65 : f32 to vector<16x1xf32>
    %220 = arith.divf %218, %219 : vector<16x1xf32>
    %221 = vector.broadcast %213 : vector<16x1xf32> to vector<16x32xf32>
    %222 = arith.subf %207, %221 : vector<16x32xf32>
    %cst_66 = arith.constant 9.99999974E-6 : f32
    %223 = vector.broadcast %cst_66 : f32 to vector<16x1xf32>
    %224 = arith.addf %220, %223 : vector<16x1xf32>
    %225 = math.rsqrt %224 : vector<16x1xf32>
    %226 = vector.broadcast %225 : vector<16x1xf32> to vector<16x32xf32>
    %227 = arith.mulf %222, %226 : vector<16x32xf32>
    %228 = vector.broadcast %208 : vector<1x32xf32> to vector<16x32xf32>
    %229 = arith.mulf %227, %228 : vector<16x32xf32>
    %230 = vector.broadcast %209 : vector<1x32xf32> to vector<16x32xf32>
    %231 = arith.addf %229, %230 : vector<16x32xf32>
    %c232 = arith.constant 232 : index
    %c0_67 = arith.constant 0 : index
    %232 = vector.load %arg2[%c232, %c0_67] : memref<344x128xf32, #tpu.memory_space<vmem>>, vector<32x64xf32>
    %233 = arith.truncf %231 : vector<16x32xf32> to vector<16x32xbf16>
    %234 = arith.truncf %232 : vector<32x64xf32> to vector<32x64xbf16>
    %cst_68 = arith.constant dense<0.000000e+00> : vector<16x64xf32>
    %235 = tpu.matmul %233, %234, %cst_68 {dimension_numbers = #tpu.dot_dimension_numbers<[1], [0], [0], [1], [0, 0, 1, 1], [], []>} : vector<16x32xbf16>, vector<32x64xbf16>, vector<16x64xf32> -> vector<16x64xf32>
    %c330 = arith.constant 330 : index
    %c0_69 = arith.constant 0 : index
    %236 = vector.load %arg2[%c330, %c0_69] : memref<344x128xf32, #tpu.memory_space<vmem>>, vector<1x64xf32>
    %237 = vector.broadcast %236 : vector<1x64xf32> to vector<16x64xf32>
    %238 = arith.addf %235, %237 : vector<16x64xf32>
    %cst_70 = arith.constant 0.000000e+00 : f32
    %239 = vector.broadcast %cst_70 : f32 to vector<16x64xf32>
    %240 = arith.maximumf %238, %239 : vector<16x64xf32>
    %c264 = arith.constant 264 : index
    %c0_71 = arith.constant 0 : index
    %241 = vector.load %arg2[%c264, %c0_71] : memref<344x128xf32, #tpu.memory_space<vmem>>, vector<64x32xf32>
    %242 = arith.truncf %240 : vector<16x64xf32> to vector<16x64xbf16>
    %243 = arith.truncf %241 : vector<64x32xf32> to vector<64x32xbf16>
    %cst_72 = arith.constant dense<0.000000e+00> : vector<16x32xf32>
    %244 = tpu.matmul %242, %243, %cst_72 {dimension_numbers = #tpu.dot_dimension_numbers<[1], [0], [0], [1], [0, 0, 1, 1], [], []>} : vector<16x64xbf16>, vector<64x32xbf16>, vector<16x32xf32> -> vector<16x32xf32>
    %c331 = arith.constant 331 : index
    %c0_73 = arith.constant 0 : index
    %245 = vector.load %arg2[%c331, %c0_73] : memref<344x128xf32, #tpu.memory_space<vmem>>, vector<1x32xf32>
    %246 = vector.broadcast %245 : vector<1x32xf32> to vector<16x32xf32>
    %247 = arith.addf %244, %246 : vector<16x32xf32>
    %248 = arith.addf %231, %247 : vector<16x32xf32>
    %c334 = arith.constant 334 : index
    %c0_74 = arith.constant 0 : index
    %249 = vector.load %arg2[%c334, %c0_74] : memref<344x128xf32, #tpu.memory_space<vmem>>, vector<1x32xf32>
    %c335 = arith.constant 335 : index
    %c0_75 = arith.constant 0 : index
    %250 = vector.load %arg2[%c335, %c0_75] : memref<344x128xf32, #tpu.memory_space<vmem>>, vector<1x32xf32>
    %cst_76 = arith.constant dense<0.000000e+00> : vector<16xf32>
    %251 = vector.multi_reduction <add>, %248, %cst_76 [1] : vector<16x32xf32> to vector<16xf32>
    %252 = vector.shape_cast %251 : vector<16xf32> to vector<16x1xf32>
    %cst_77 = arith.constant 3.200000e+01 : f32
    %253 = vector.broadcast %cst_77 : f32 to vector<16x1xf32>
    %254 = arith.divf %252, %253 : vector<16x1xf32>
    %255 = vector.broadcast %254 : vector<16x1xf32> to vector<16x32xf32>
    %256 = arith.subf %248, %255 : vector<16x32xf32>
    %257 = arith.mulf %256, %256 : vector<16x32xf32>
    %cst_78 = arith.constant dense<0.000000e+00> : vector<16xf32>
    %258 = vector.multi_reduction <add>, %257, %cst_78 [1] : vector<16x32xf32> to vector<16xf32>
    %259 = vector.shape_cast %258 : vector<16xf32> to vector<16x1xf32>
    %cst_79 = arith.constant 3.200000e+01 : f32
    %260 = vector.broadcast %cst_79 : f32 to vector<16x1xf32>
    %261 = arith.divf %259, %260 : vector<16x1xf32>
    %262 = vector.broadcast %254 : vector<16x1xf32> to vector<16x32xf32>
    %263 = arith.subf %248, %262 : vector<16x32xf32>
    %cst_80 = arith.constant 9.99999974E-6 : f32
    %264 = vector.broadcast %cst_80 : f32 to vector<16x1xf32>
    %265 = arith.addf %261, %264 : vector<16x1xf32>
    %266 = math.rsqrt %265 : vector<16x1xf32>
    %267 = vector.broadcast %266 : vector<16x1xf32> to vector<16x32xf32>
    %268 = arith.mulf %263, %267 : vector<16x32xf32>
    %269 = vector.broadcast %249 : vector<1x32xf32> to vector<16x32xf32>
    %270 = arith.mulf %268, %269 : vector<16x32xf32>
    %271 = vector.broadcast %250 : vector<1x32xf32> to vector<16x32xf32>
    %272 = arith.addf %270, %271 : vector<16x32xf32>
    %c336 = arith.constant 336 : index
    %c0_81 = arith.constant 0 : index
    %273 = vector.load %arg2[%c336, %c0_81] : memref<344x128xf32, #tpu.memory_space<vmem>>, vector<1x32xf32>
    %c337 = arith.constant 337 : index
    %c0_82 = arith.constant 0 : index
    %274 = vector.load %arg2[%c337, %c0_82] : memref<344x128xf32, #tpu.memory_space<vmem>>, vector<1x32xf32>
    %cst_83 = arith.constant dense<0.000000e+00> : vector<16xf32>
    %275 = vector.multi_reduction <add>, %272, %cst_83 [1] : vector<16x32xf32> to vector<16xf32>
    %276 = vector.shape_cast %275 : vector<16xf32> to vector<16x1xf32>
    %cst_84 = arith.constant 3.200000e+01 : f32
    %277 = vector.broadcast %cst_84 : f32 to vector<16x1xf32>
    %278 = arith.divf %276, %277 : vector<16x1xf32>
    %279 = vector.broadcast %278 : vector<16x1xf32> to vector<16x32xf32>
    %280 = arith.subf %272, %279 : vector<16x32xf32>
    %281 = arith.mulf %280, %280 : vector<16x32xf32>
    %cst_85 = arith.constant dense<0.000000e+00> : vector<16xf32>
    %282 = vector.multi_reduction <add>, %281, %cst_85 [1] : vector<16x32xf32> to vector<16xf32>
    %283 = vector.shape_cast %282 : vector<16xf32> to vector<16x1xf32>
    %cst_86 = arith.constant 3.200000e+01 : f32
    %284 = vector.broadcast %cst_86 : f32 to vector<16x1xf32>
    %285 = arith.divf %283, %284 : vector<16x1xf32>
    %286 = vector.broadcast %278 : vector<16x1xf32> to vector<16x32xf32>
    %287 = arith.subf %272, %286 : vector<16x32xf32>
    %cst_87 = arith.constant 9.99999974E-6 : f32
    %288 = vector.broadcast %cst_87 : f32 to vector<16x1xf32>
    %289 = arith.addf %285, %288 : vector<16x1xf32>
    %290 = math.rsqrt %289 : vector<16x1xf32>
    %291 = vector.broadcast %290 : vector<16x1xf32> to vector<16x32xf32>
    %292 = arith.mulf %287, %291 : vector<16x32xf32>
    %293 = vector.broadcast %273 : vector<1x32xf32> to vector<16x32xf32>
    %294 = arith.mulf %292, %293 : vector<16x32xf32>
    %295 = vector.broadcast %274 : vector<1x32xf32> to vector<16x32xf32>
    %296 = arith.addf %294, %295 : vector<16x32xf32>
    %cst_88 = arith.constant dense<0.000000e+00> : vector<16xf32>
    %297 = vector.multi_reduction <add>, %296, %cst_88 [1] : vector<16x32xf32> to vector<16xf32>
    %298 = vector.shape_cast %297 : vector<16xf32> to vector<16x1xf32>
    %cst_89 = arith.constant 3.200000e+01 : f32
    %299 = vector.broadcast %cst_89 : f32 to vector<16x1xf32>
    %300 = arith.divf %298, %299 : vector<16x1xf32>
    %301 = vector.broadcast %300 : vector<16x1xf32> to vector<16x32xf32>
    %302 = arith.subf %296, %301 : vector<16x32xf32>
    %303 = arith.mulf %302, %302 : vector<16x32xf32>
    %cst_90 = arith.constant dense<0.000000e+00> : vector<16xf32>
    %304 = vector.multi_reduction <add>, %303, %cst_90 [1] : vector<16x32xf32> to vector<16xf32>
    %305 = vector.shape_cast %304 : vector<16xf32> to vector<16x1xf32>
    %cst_91 = arith.constant 3.200000e+01 : f32
    %306 = vector.broadcast %cst_91 : f32 to vector<16x1xf32>
    %307 = arith.divf %305, %306 : vector<16x1xf32>
    %308 = vector.broadcast %300 : vector<16x1xf32> to vector<16x32xf32>
    %309 = arith.subf %296, %308 : vector<16x32xf32>
    %cst_92 = arith.constant 9.99999974E-6 : f32
    %310 = vector.broadcast %cst_92 : f32 to vector<16x1xf32>
    %311 = arith.addf %307, %310 : vector<16x1xf32>
    %312 = math.rsqrt %311 : vector<16x1xf32>
    %313 = vector.broadcast %312 : vector<16x1xf32> to vector<16x32xf32>
    %314 = arith.mulf %309, %313 : vector<16x32xf32>
    %315 = vector.broadcast %273 : vector<1x32xf32> to vector<16x32xf32>
    %316 = arith.mulf %314, %315 : vector<16x32xf32>
    %317 = vector.broadcast %274 : vector<1x32xf32> to vector<16x32xf32>
    %318 = arith.addf %316, %317 : vector<16x32xf32>
    %c338 = arith.constant 338 : index
    %c0_93 = arith.constant 0 : index
    %319 = vector.load %arg2[%c338, %c0_93] : memref<344x128xf32, #tpu.memory_space<vmem>>, vector<1x32xf32>
    %c339 = arith.constant 339 : index
    %c0_94 = arith.constant 0 : index
    %320 = vector.load %arg2[%c339, %c0_94] : memref<344x128xf32, #tpu.memory_space<vmem>>, vector<1x1xf32>
    %321 = vector.shape_cast %318 : vector<16x32xf32> to vector<2x8x32xf32>
    %322 = vector.shape_cast %319 : vector<1x32xf32> to vector<1x1x32xf32>
    %323 = vector.broadcast %322 : vector<1x1x32xf32> to vector<2x8x32xf32>
    %324 = arith.mulf %321, %323 : vector<2x8x32xf32>
    %cst_95 = arith.constant dense<0.000000e+00> : vector<2x8xf32>
    %325 = vector.multi_reduction <add>, %324, %cst_95 [2] : vector<2x8x32xf32> to vector<2x8xf32>
    %326 = vector.broadcast %320 : vector<1x1xf32> to vector<2x8xf32>
    %327 = arith.addf %325, %326 : vector<2x8xf32>
    %cst_96 = arith.constant dense<0.000000e+00> : vector<2xf32>
    %328 = vector.multi_reduction <add>, %327, %cst_96 [1] : vector<2x8xf32> to vector<2xf32>
    %329 = vector.shape_cast %328 : vector<2xf32> to vector<2x1xf32>
    %cst_97 = arith.constant 8.000000e+00 : f32
    %330 = vector.broadcast %cst_97 : f32 to vector<2x1xf32>
    %331 = arith.divf %329, %330 : vector<2x1xf32>
    %332 = vector.broadcast %331 : vector<2x1xf32> to vector<2x8xf32>
    %333 = arith.subf %327, %332 : vector<2x8xf32>
    %334 = arith.mulf %333, %333 : vector<2x8xf32>
    %cst_98 = arith.constant dense<0.000000e+00> : vector<2xf32>
    %335 = vector.multi_reduction <add>, %334, %cst_98 [1] : vector<2x8xf32> to vector<2xf32>
    %336 = vector.shape_cast %335 : vector<2xf32> to vector<2x1xf32>
    %cst_99 = arith.constant 7.000000e+00 : f32
    %337 = vector.broadcast %cst_99 : f32 to vector<2x1xf32>
    %338 = arith.divf %336, %337 : vector<2x1xf32>
    %339 = vector.broadcast %331 : vector<2x1xf32> to vector<2x8xf32>
    %340 = arith.subf %327, %339 : vector<2x8xf32>
    %341 = math.rsqrt %338 : vector<2x1xf32>
    %342 = vector.broadcast %341 : vector<2x1xf32> to vector<2x8xf32>
    %343 = arith.mulf %340, %342 : vector<2x8xf32>
    %344 = arith.negf %343 : vector<2x8xf32>
    %345 = math.exp %344 : vector<2x8xf32>
    %cst_100 = arith.constant 1.000000e+00 : f32
    %346 = vector.broadcast %cst_100 : f32 to vector<2x8xf32>
    %347 = arith.addf %346, %345 : vector<2x8xf32>
    %348 = arith.divf %346, %347 : vector<2x8xf32>
    %c0_101 = arith.constant 0 : index
    %c0_102 = arith.constant 0 : index
    %349 = vector.load %arg3[%c0_101, %c0_102] : memref<2x8xf32, #tpu.memory_space<vmem>>, vector<2x8xf32>
    tpu.vector_store %arg3[%c0_101, %c0_102], %348 {strides = array<i32>} : memref<2x8xf32, #tpu.memory_space<vmem>>, vector<2x8xf32>,
    return
  }
}

</mosaic_0001>

<bundles_post_ra>
// kernel: tpu_custom_call.1
= control target key start
LH: loop header
LB: loop body
LE: loop exit
PB: predicated region body
PF: predicated region fallthrough
CT: control target
= control target key end

     0   :  { %8 = vsyncpa [#allocation3], 0  ;;  %s1945_s0 = inlined_call_operand.hbm [shape: f32[16,32], index: 0, kind: input, shape index: {}]   ;;  %s1946_s1 = inlined_call_operand.hbm [shape: f32[2,8], index: 1, kind: input, shape index: {}]   ;;  %s1947_s2 = inlined_call_operand.hbm [shape: f32[344,128], index: 2, kind: input, shape index: {}]   ;;  %s1948_s3 = inlined_call_operand.hbm [shape: f32[2,8], index: 3, kind: output, shape index: {}]  }
   0x1   :  { %9 = vsyncpa [#allocation6], 0  ;;  %s29_s14 = sshll.u32 %s1946_s1, 4  ;;  %s30_s14 = int_to_ptr.hbm [resolvable:$true] %s29_s14 }
   0x2   :  { %10 = vsyncpa [#allocation4], 0  ;;  %s1657_s15 = smov [#allocation5]   ;;  %s15_s19 = sshll.u32 %s1945_s0, 4  ;;  %s16_s19 = int_to_ptr.hbm [resolvable:$true] %s15_s19 }
   0x3   :  { %s31_s16 = sshll.u32 %s1657_s15, 4  ;;  %s1658_s20 = smov [#allocation2]   ;;  %s32_s16 = int_to_ptr.vmem [resolvable:$true] %s31_s16 }
   0x4   :  { %34 = dma.hbm_to_vmem [thread:$0]  %s30_s14, 32, %s32_s16, [#allocation6]  }
   0x5   :  { %s17_s21 = sshll.u32 %s1658_s20, 4  ;;  %s1659_s22 = smov 128   ;;  %s18_s21 = int_to_ptr.vmem [resolvable:$true] %s17_s21 }
   0x6   :  { %s1660_s23 = smov 8   ;;  %s39_s1 = sshll.u32 %s1947_s2, 4  ;;  %s40_s1 = int_to_ptr.hbm [resolvable:$true] %s39_s1 }
   0x7   :  { %23 = dma.hbm_to_vmem [thread:$0]  %s16_s19, 256, %s18_s21, [#allocation3], %s1659_s22, %s1659_s22, %s1660_s23  }
   0x8   :  { %s1661_s26 = smov [#allocation7]  }
   0x9   :  { %s41_s27 = sshll.u32 %s1661_s26, 4  ;;  %s42_s27 = int_to_ptr.vmem [resolvable:$true] %s41_s27 }
   0xa   :  { %47 = dma.hbm_to_vmem [thread:$0]  %s40_s1, 5504, %s42_s27, [#allocation6], %s1659_s22, %s1659_s22, %s1660_s23  }
   0xb   :  { %1651 = dma.done.wait [#allocation3], 256  }
   0xc   :  { %1652 = vsyncadd [#allocation3], 4294967040 }
   0xd   :  { %1653 = dma.done.wait [#allocation6], 5536  }
   0xe   :  { %1654 = vsyncadd [#allocation6], 4294961760  ;;  %v88_v0 = vld [vmem:[#allocation7 + $0x10] sm:$0xff]  ;;  %v89_v1 = vld [vmem:[#allocation7 + $0x18] sm:$0xff]  ;;  %vm95_vm0 = vcmask 261120   ;;  %s1662_s0 = smov 80   ;;  %v65_v28 = vlaneseq }
   0xf   :  { %v86_v2 = vld [vmem:[#allocation7] sm:$0xff]  ;;  %v92_v3 = vpack.c.bf16 %v89_v1, %v88_v0  ;;  %v87_v4 = vld [vmem:[#allocation7 + $0x8] sm:$0xff]  ;;  %v1703_v6 = vld [vmem:[#allocation2 + $0x8] sm:$0xff]  ;;  %s1663_s2 = smov 96   ;;  %s1664_s28 = smov 112   ;;  %vm128_vm1 = vcmask 130048  }
  0x10   :  { %v1701_v5 = vld [vmem:[#allocation2] sm:$0xff]  ;;  %v91_v7 = vpack.c.bf16 %v87_v4, %v86_v2  ;;  %v1464_v9 = vld [vmem:[#allocation7 + $0xa0] ss:$0 sm:$0xff]  ;;  %v66_v29 = vshrl.u32 %v65_v28, 7  ;;  %v63_v30 = vld [vmem:[#allocation5] sm:$0x3] }
  0x11   :  { %105 = vmatpush.bf16.msra.mxu0 %v92_v3  ;;  %v90_v8 = vpack.c.bf16 %v1703_v6, %v1701_v5  ;;  %v64_v31 = vperm.slane %v63_v30, 0  ;;  %v71_v32 = vperm.slane %v63_v30, 1  ;;  %vm172_vm2 = vcmask 64512   ;;  %s1665_s29 = smov 64   ;;  %s1666_s30 = smov 48  }
  0x12   :  { %1459 = vset.pattern.permute.xlu0 %v66_v29  ;;  %1460 = vset.pattern.permute.xlu1 %v66_v29  ;;  %v79_v51 = vrot.slane %v63_v30, 1  ;;  %vm228_vm3 = vcmask 1043456   ;;  %s1671_s5 = smov [#allocation8]   ;;  %s1403_s9 = sshll.u32 %s1948_s3, 4  ;;  %s1404_s9 = int_to_ptr.hbm [resolvable:$true] %s1403_s9 }
  0x13   :  { %s1401_s6 = sshll.u32 %s1671_s5, 4  ;;  %s1402_s6 = int_to_ptr.vmem [resolvable:$true] %s1401_s6 }
  0x14   :  { %v81_v52 = vperm.slane %v79_v51, 0 }
  0x15   :  { %106 = vmatpush.bf16.msra.mxu0 %v91_v7 }
  0x18   :  { %1414 = vmatmul.msk.bf16.vlgmr.msra.gmra.mxu0 %vm95_vm0, %v90_v8 }
  0x95   :  { %v108_v10 = vpop.f32.mrf.mxu0 }
  0x96   :  { %v109_v11 = vadd.f32 %v1464_v9, %v108_v10 }
  0x98   :  { %v117_v12 = vmul.f32 0.25, %v109_v11  ;;  %v121_v13 = vpack.c.bf16 %v109_v11, %v109_v11 }
  0x9a   :  { %v119_v14 = vpack.c.bf16 %v117_v12, %v117_v12  ;;  %v124_v15 = vunpack.c.l.b16 %v121_v13 }
  0x9c   :  { %v1708_v16 = vpack.c.b16 %v124_v15, %v124_v15  ;;  %v269_v17 = vunpack.c.l.b16 %v119_v14 }
  0x9d   :  { %v110_v18 = vpop.f32.mrf.mxu0 }
  0x9e   :  { %v111_v19 = vadd.f32 %v1464_v9, %v110_v18  ;;  %273 = vrot.lane.b32.xlu1 %v1708_v16, %s1662_s0  ;;  %126 = vrot.lane.b32.xlu0 %v1708_v16, %s1663_s2  ;;  %v270_v20 = vpack.c.b16 %v269_v17, %v269_v17 }
  0xa0   :  { %v118_v21 = vmul.f32 0.25, %v111_v19  ;;  %v122_v22 = vpack.c.bf16 %v111_v19, %v111_v19  ;;  %271 = vrot.lane.b32.xlu2 %v270_v20, %s1664_s28 }
  0xa2   :  { %v120_v23 = vpack.c.bf16 %v118_v21, %v118_v21  ;;  %v149_v24 = vunpack.c.l.b16 %v122_v22 }
  0xa4   :  { %v1715_v25 = vpack.c.b16 %v149_v24, %v149_v24  ;;  %v295_v26 = vunpack.c.l.b16 %v120_v23 }
  0xa6   :  { %299 = vrot.lane.b32.xlu1 %v1715_v25, %s1662_s0  ;;  %151 = vrot.lane.b32.xlu0 %v1715_v25, %s1663_s2  ;;  %v296_v27 = vpack.c.b16 %v295_v26, %v295_v26 }
  0xa8   :  { %297 = vrot.lane.b32.xlu2 %v296_v27, %s1664_s28 }
  0xae   :  { %69 = vperm.xlu0 %1459, %v64_v31   ;;  %76 = vperm.xlu1 %1460, %v71_v32  }
  0xfa   :  { %v272_v37 = vpop.permute.xlu2 %271 }
 0x102   :  { %v298_v42 = vpop.permute.xlu2 %297 }
 0x110   :  { %v274_v33 = vpop.permute.xlu1 %273  ;;  %v127_v34 = vpop.permute.xlu0 %126 }
 0x111   :  { %v133_v35 = vsel %vm128_vm1, %v127_v34, 0  ;;  %v279_v36 = vsel %vm128_vm1, %v274_v33, 0 }
 0x112   :  { %142 = vmatpush.bf16.xpose.msra.mxu1 %v133_v35  ;;  %288 = vmatpush.bf16.xpose.msrb.mxu0 %v279_v36 }
 0x118   :  { %v300_v38 = vpop.permute.xlu1 %299  ;;  %v152_v39 = vpop.permute.xlu0 %151 }
 0x119   :  { %1415 = vmatmul.msk.bf16.vlgmr.msra.gmra.mxu1 %vm128_vm1, %v119_v14  ;;  %1419 = vmatmul.msk.bf16.vlgmr.msrb.gmra.mxu0 %vm128_vm1, %v272_v37  ;;  %v157_v40 = vsel %vm128_vm1, %v152_v39, 0  ;;  %v305_v41 = vsel %vm128_vm1, %v300_v38, 0 }
 0x11a   :  { %166 = vmatpush.bf16.xpose.msra.mxu2 %v157_v40  ;;  %314 = vmatpush.bf16.xpose.msrb.mxu1 %v305_v41 }
 0x120   :  { %v70_v43 = vpop.permute.xlu0 %69  ;;  %v77_v53 = vpop.permute.xlu1 %76 }
 0x121   :  { %1416 = vmatmul.msk.bf16.vlgmr.msra.gmra.mxu2 %vm128_vm1, %v120_v23  ;;  %v1731_v44 = vmin.f32 %v70_v43, %v64_v31  ;;  %v1737_v56 = vmin.f32 %v77_v53, %v81_v52 }
 0x129   :  { %1420 = vmatmul.msk.bf16.vlgmr.msrb.gmra.mxu1 %vm128_vm1, %v298_v42 }
 0x196   :  { %v144_v45 = vpop.f32.mrf.mxu1  ;;  %v290_v46 = vpop.f32.mrf.mxu0 }
 0x197   :  { %v145_v47 = vadd.f32 %v144_v45, %v1731_v44  ;;  %v291_v48 = vadd.f32 %v290_v46, %v1731_v44 }
 0x199   :  { %v320_v49 = vsel %vm172_vm2, %v291_v48, -inf  ;;  %v173_v50 = vsel %vm172_vm2, %v145_v47, -inf }
 0x19a   :  { %321 = vmax.xlane.f32.xlu0 %v320_v49  ;;  %174 = vmax.xlane.f32.xlu2 %v173_v50 }
 0x19e   :  { %v146_v54 = vpop.f32.mrf.mxu1  ;;  %v292_v55 = vpop.f32.mrf.mxu0 }
 0x1a4   :  { %v168_v57 = vpop.f32.mrf.mxu2 }
 0x1a5   :  { %v169_v58 = vadd.f32 %v168_v57, %v1737_v56 }
 0x1a6   :  { %v316_v59 = vpop.f32.mrf.mxu1 }
 0x1a7   :  { %v317_v60 = vadd.f32 %v316_v59, %v1737_v56  ;;  %v176_v61 = vsel %vm172_vm2, %v169_v58, -inf }
 0x1a8   :  { %177 = vmax.xlane.f32.xlu1 %v176_v61 }
 0x1a9   :  { %v323_v62 = vsel %vm172_vm2, %v317_v60, -inf }
 0x1aa   :  { %324 = vmax.xlane.f32.xlu2 %v323_v62 }
 0x1ac   :  { %v170_v63 = vpop.f32.mrf.mxu2 }
 0x1ae   :  { %v318_v0 = vpop.f32.mrf.mxu1 }
 0x20d   :  { %v322_v1 = vpop.xlane.xlu0 %321  ;;  %v175_v2 = vpop.xlane.xlu2 %174 }
 0x20e   :  { %v326_v3 = vsub.f32 %v291_v48, %v322_v1  ;;  %v179_v4 = vsub.f32 %v145_v47, %v175_v2 }
 0x210   :  { %v328_v7 = vmul.f32 1.442695, %v326_v3  ;;  %v181_v8 = vmul.f32 1.442695, %v179_v4 }
 0x212   :  { %1483 = vpow2.f32 %v328_v7 }
 0x213   :  { %1485 = vpow2.f32 %v181_v8 }
 0x218   :  { %v1743_v9 = vpop.eup %1483 }
 0x219   :  { %v1486_v10 = vpop.eup %1485  ;;  %v332_v11 = vsel %vm172_vm2, %v1743_v9, 0.0 }
 0x21a   :  { %333 = vadd.xlane.f32.xlu0 %v332_v11  ;;  %v185_v12 = vsel %vm172_vm2, %v1486_v10, 0.0 }
 0x21b   :  { %186 = vadd.xlane.f32.xlu2 %v185_v12  ;;  %v178_v13 = vpop.xlane.xlu1 %177 }
 0x21c   :  { %v180_v14 = vsub.f32 %v169_v58, %v178_v13 }
 0x21d   :  { %v325_v15 = vpop.xlane.xlu2 %324 }
 0x21e   :  { %v183_v17 = vmul.f32 1.442695, %v180_v14  ;;  %v327_v18 = vsub.f32 %v317_v60, %v325_v15 }
 0x220   :  { %1487 = vpow2.f32 %v183_v17  ;;  %v330_v19 = vmul.f32 1.442695, %v327_v18 }
 0x222   :  { %1489 = vpow2.f32 %v330_v19 }
 0x226   :  { %v1748_v20 = vpop.eup %1487 }
 0x227   :  { %v188_v21 = vsel %vm172_vm2, %v1748_v20, 0.0 }
 0x228   :  { %189 = vadd.xlane.f32.xlu1 %v188_v21  ;;  %v1752_v22 = vpop.eup %1489 }
 0x229   :  { %v335_v23 = vsel %vm172_vm2, %v1752_v22, 0.0 }
 0x22e   :  { %245 = vrot.lane.b32.xlu0 %v1715_v25, %s1665_s29 }
 0x230   :  { %336 = vadd.xlane.f32.xlu1 %v335_v23 }
 0x233   :  { %223 = vrot.lane.b32.xlu2 %v1708_v16, %s1665_s29 }
 0x23b   :  { %391 = vrot.lane.b32.xlu2 %v1715_v25, %s1666_s30 }
 0x249   :  { %370 = vrot.lane.b32.xlu1 %v1708_v16, %s1666_s30 }
 0x28d   :  { %v1765_v31 = vpop.xlane.xlu0 %333 }
 0x28e   :  { %v187_v24 = vpop.xlane.xlu2 %186  ;;  %v349_v3 = vand.u32 2147483648, %v1765_v31  ;;  %vm343_vm13 = vweird.f32 %v1765_v31  ;;  %v347_v7 = vand.u32 2147483647, %v1765_v31 }
 0x28f   :  { %1491 = vrcp.f32 %v187_v24  ;;  %v202_v34 = vand.u32 2147483648, %v187_v24  ;;  %v200_v35 = vand.u32 2147483647, %v187_v24  ;;  %vm196_vm5 = vweird.f32 %v187_v24 }
 0x290   :  { %1493 = vrcp.f32 %v1765_v31  ;;  %v350_v11 = vor.u32 1.1754944e-38, %v349_v3 }
 0x291   :  { %v203_v36 = vor.u32 1.1754944e-38, %v202_v34  ;;  %vm201_vm7 = vcmp.eq.f32.partialorder %v200_v35, 8.507059e+37 }
 0x295   :  { %v1492_v26 = vpop.eup %1491 }
 0x296   :  { %v192_v27 = vmul.f32 %v1492_v26, %v187_v24  ;;  %v224_v29 = vpop.permute.xlu2 %223  ;;  %vm197_vm4 = vweird.f32 %v1492_v26  ;;  %v1494_v40 = vpop.eup %1493 }
 0x297   :  { %v230_v30 = vsel %vm228_vm3, %v224_v29, 0  ;;  %vm198_vm6 = vmor %vm196_vm5, %vm197_vm4  ;;  %v339_v49 = vmul.f32 %v1494_v40, %v1765_v31  ;;  %vm344_vm12 = vweird.f32 %v1494_v40  ;;  %vm348_vm4 = vcmp.eq.f32.partialorder %v347_v7, 8.507059e+37  ;;  %v113_v29 = vld [vmem:[#allocation7 + $0x20] sm:$0xff] }
 0x298   :  { %v193_v32 = vsub.f32 1.0, %v192_v27  ;;  %239 = vmatpush.bf16.msra.mxu3 %v230_v30  ;;  %vm345_vm14 = vmor %vm343_vm13, %vm344_vm12  ;;  %v114_v30 = vld [vmem:[#allocation7 + $0x28] sm:$0xff] }
 0x299   :  { %v340_v55 = vsub.f32 1.0, %v339_v49  ;;  %v267_v31 = vpack.c.bf16 %v114_v30, %v113_v29 }
 0x29a   :  { %v194_v33 = vmul.f32 %v1492_v26, %v193_v32  ;;  %v115_v32 = vld [vmem:[#allocation7 + $0x30] sm:$0xff] }
 0x29b   :  { %v190_v25 = vpop.xlane.xlu1 %189  ;;  %v341_v62 = vmul.f32 %v1494_v40, %v340_v55  ;;  %441 = vmatpush.bf16.msra.mxu1 %v267_v31  ;;  %v1667_v55 = vmov 32.0  }
 0x29c   :  { %1495 = vrcp.f32 %v190_v25  ;;  %v195_v16 = vadd.f32 %v1492_v26, %v194_v33  ;;  %v217_v52 = vand.u32 2147483648, %v190_v25  ;;  %v215_v54 = vand.u32 2147483647, %v190_v25 }
 0x29d   :  { %vm211_vm9 = vweird.f32 %v190_v25  ;;  %v342_v2 = vadd.f32 %v1494_v40, %v341_v62 }
 0x29e   :  { %v199_v37 = vsel %vm198_vm6, %v1492_v26, %v195_v16  ;;  %v392_v45 = vpop.permute.xlu2 %391  ;;  %v218_v59 = vor.u32 1.1754944e-38, %v217_v52  ;;  %vm216_vm11 = vcmp.eq.f32.partialorder %v215_v54, 8.507059e+37 }
 0x29f   :  { %v204_v39 = vsel %vm201_vm7, %v203_v36, %v199_v37  ;;  %v397_v51 = vsel %vm228_vm3, %v392_v45, 0 }
 0x2a0   :  { %v246_v38 = vpop.permute.xlu0 %245  ;;  %v205_v42 = vmul.f32 %v1486_v10, %v204_v39  ;;  %v346_v10 = vsel %vm345_vm14, %v1494_v40, %v342_v2 }
 0x2a1   :  { %v251_v41 = vsel %vm228_vm3, %v246_v38, 0  ;;  %v351_v15 = vsel %vm348_vm4, %v350_v11, %v346_v10  ;;  %v515_v10 = vld [vmem:[#allocation7 + $0x50] sm:$0xff]  ;;  %v516_v11 = vld [vmem:[#allocation7 + $0x58] sm:$0xff] }
 0x2a2   :  { %v1496_v43 = vpop.eup %1495  ;;  %260 = vmatpush.bf16.msrb.mxu3 %v251_v41  ;;  %v221_v48 = vpack.c.bf16 %v205_v42, %v205_v42  ;;  %v352_v19 = vmul.f32 %v1743_v9, %v351_v15  ;;  %v116_v9 = vld [vmem:[#allocation7 + $0x38] sm:$0xff]  ;;  %v1465_v42 = vld [vmem:[#allocation7 + $0xa1] ss:$0 sm:$0xff] }
 0x2a3   :  { %v207_v46 = vmul.f32 %v1496_v43, %v190_v25  ;;  %v337_v47 = vpop.xlane.xlu1 %336  ;;  %vm212_vm8 = vweird.f32 %v1496_v43  ;;  %v413_v33 = vpack.c.bf16 %v116_v9, %v115_v32  ;;  %v513_v15 = vld [vmem:[#allocation7 + $0x40] sm:$0xff] }
 0x2a4   :  { %1497 = vrcp.f32 %v337_v47  ;;  %1417 = vmatmul.msk.bf16.vlgmr.msra.gmra.mxu3 %vm172_vm2, %v221_v48  ;;  %vm213_vm10 = vmor %vm211_vm9, %vm212_vm8  ;;  %v364_v13 = vand.u32 2147483648, %v337_v47  ;;  %vm358_vm5 = vweird.f32 %v337_v47  ;;  %v362_v14 = vand.u32 2147483647, %v337_v47 }
 0x2a5   :  { %v208_v50 = vsub.f32 1.0, %v207_v46  ;;  %v368_v24 = vpack.c.bf16 %v352_v19, %v352_v19  ;;  %424 = vmatpush.bf16.msra.mxu0 %v413_v33  ;;  %1499 = vrcp.f32 %v1667_v55  ;;  %v541_v55 = vld [vmem:[#allocation7 + $0x60] sm:$0xff] }
 0x2a6   :  { %406 = vmatpush.bf16.msra.mxu3 %v397_v51  ;;  %v365_v18 = vor.u32 1.1754944e-38, %v364_v13  ;;  %vm363_vm7 = vcmp.eq.f32.partialorder %v362_v14, 8.507059e+37 }
 0x2a7   :  { %v209_v53 = vmul.f32 %v1496_v43, %v208_v50 }
 0x2a9   :  { %v210_v57 = vadd.f32 %v1496_v43, %v209_v53 }
 0x2aa   :  { %v1498_v58 = vpop.eup %1497 }
 0x2ab   :  { %v354_v60 = vmul.f32 %v1498_v58, %v337_v47  ;;  %v214_v61 = vsel %vm213_vm10, %v1496_v43, %v210_v57  ;;  %vm359_vm15 = vweird.f32 %v1498_v58  ;;  %v1500_v57 = vpop.eup %1499 }
 0x2ac   :  { %v219_v63 = vsel %vm216_vm11, %v218_v59, %v214_v61  ;;  %vm360_vm6 = vmor %vm358_vm5, %vm359_vm15  ;;  %vm467_vm8 = vweird.f32 %v1500_v57  ;;  %vm556_vm15 = vcmask 523264  }
 0x2ad   :  { %v355_v0 = vsub.f32 1.0, %v354_v60  ;;  %v220_v1 = vmul.f32 %v1748_v20, %v219_v63 }
 0x2af   :  { %v356_v4 = vmul.f32 %v1498_v58, %v355_v0  ;;  %v222_v8 = vpack.c.bf16 %v220_v1, %v220_v1 }
 0x2b1   :  { %v357_v12 = vadd.f32 %v1498_v58, %v356_v4 }
 0x2b3   :  { %v361_v17 = vsel %vm360_vm6, %v1498_v58, %v357_v12  ;;  %v463_v58 = vmul.f32 32.0, %v1500_v57  ;;  %v519_v12 = vpack.c.bf16 %v516_v11, %v515_v10 }
 0x2b4   :  { %1418 = vmatmul.msk.bf16.vlgmr.msrb.gmra.mxu3 %vm172_vm2, %v222_v8  ;;  %v366_v21 = vsel %vm363_vm7, %v365_v18, %v361_v17  ;;  %v514_v17 = vld [vmem:[#allocation7 + $0x48] sm:$0xff] }
 0x2b5   :  { %v367_v26 = vmul.f32 %v1752_v22, %v366_v21  ;;  %v464_v59 = vsub.f32 1.0, %v463_v58  ;;  %v518_v19 = vpack.c.bf16 %v514_v17, %v513_v15 }
 0x2b7   :  { %v369_v27 = vpack.c.bf16 %v367_v26, %v367_v26  ;;  %v465_v60 = vmul.f32 %v1500_v57, %v464_v59 }
 0x2b9   :  { %v466_v61 = vadd.f32 %v1500_v57, %v465_v60  ;;  %v1468_v60 = vld [vmem:[#allocation7 + $0xa2] ss:$0 sm:$0xff] }
 0x2bb   :  { %v371_v20 = vpop.permute.xlu1 %370 }
 0x2bc   :  { %v376_v23 = vsel %vm228_vm3, %v371_v20, 0 }
 0x2bd   :  { %385 = vmatpush.bf16.msrb.mxu2 %v376_v23 }
 0x2c0   :  { %1421 = vmatmul.msk.bf16.vlgmr.msrb.gmra.mxu2 %vm172_vm2, %v368_v24 }
 0x2c1   :  { %531 = vmatpush.bf16.msra.mxu2 %v519_v12 }
 0x2c4   :  { %1422 = vmatmul.msk.bf16.vlgmr.msra.gmra.mxu3 %vm172_vm2, %v369_v27 }
 0x2c5   :  { %532 = vmatpush.bf16.msra.mxu2 %v518_v19 }
 0x327   :  { %v241_v34 = vpop.f32.mrf.mxu3 }
 0x32f   :  { %v243_v25 = vpop.f32.mrf.mxu3 }
 0x337   :  { %v262_v35 = vpop.f32.mrf.mxu3 }
 0x338   :  { %v266_v16 = vpack.c.bf16 %v262_v35, %v241_v34 }
 0x33a   :  { %1424 = vmatmul.msk.bf16.vlgmr.msra.gmra.mxu1 %vm128_vm1, %v266_v16  ;;  %v1466_v16 = vld [vmem:[#allocation7 + $0xa4] ss:$0 sm:$0xff] }
 0x33f   :  { %v264_v22 = vpop.f32.mrf.mxu3 }
 0x343   :  { %v387_v36 = vpop.f32.mrf.mxu2 }
 0x347   :  { %v408_v37 = vpop.f32.mrf.mxu3 }
 0x348   :  { %v412_v38 = vpack.c.bf16 %v408_v37, %v387_v36 }
 0x34a   :  { %1423 = vmatmul.msk.bf16.vlgmr.msra.gmra.mxu0 %vm128_vm1, %v412_v38  ;;  %v1467_v38 = vld [vmem:[#allocation7 + $0xa5] ss:$0 sm:$0xff] }
 0x34b   :  { %v389_v39 = vpop.f32.mrf.mxu2 }
 0x34f   :  { %v410_v40 = vpop.f32.mrf.mxu3 }
 0x3b7   :  { %v443_v41 = vpop.f32.mrf.mxu1 }
 0x3bf   :  { %v445_v49 = vpop.f32.mrf.mxu1 }
 0x3c7   :  { %v426_v43 = vpop.f32.mrf.mxu0 }
 0x3c8   :  { %v444_v45 = vadd.f32 %v443_v41, %v426_v43 }
 0x3ca   :  { %v450_v46 = vadd.f32 %v1465_v42, %v444_v45 }
 0x3cc   :  { %v452_v47 = vadd.f32 %v450_v46, %v1701_v5  ;;  %v1788_v5 = vsel %vm467_vm8, %v1500_v57, %v466_v61  ;;  %v547_v46 = vld [vmem:[#allocation7 + $0x90] sm:$0xff]  ;;  %v542_v57 = vld [vmem:[#allocation7 + $0x68] sm:$0xff] }
 0x3cd   :  { %v550_v58 = vpack.c.bf16 %v542_v57, %v541_v55 }
 0x3ce   :  { %v456_v48 = vsel %vm95_vm0, %v452_v47, 0.0 }
 0x3cf   :  { %457 = vadd.xlane.f32.xlu0 %v456_v48  ;;  %v428_v50 = vpop.f32.mrf.mxu0 }
 0x3d0   :  { %v446_v51 = vadd.f32 %v445_v49, %v428_v50  ;;  %v545_v49 = vld [vmem:[#allocation7 + $0x80] sm:$0xff]  ;;  %v546_v50 = vld [vmem:[#allocation7 + $0x88] sm:$0xff] }
 0x3d2   :  { %v451_v52 = vadd.f32 %v1465_v42, %v446_v51  ;;  %v552_v51 = vpack.c.bf16 %v546_v50, %v545_v49  ;;  %v1470_v49 = vld [vmem:[#allocation7 + $0xa6] ss:$0 sm:$0xff] }
 0x3d4   :  { %v453_v53 = vadd.f32 %v451_v52, %v1703_v6  ;;  %v543_v52 = vld [vmem:[#allocation7 + $0x70] sm:$0xff] }
 0x3d6   :  { %v459_v54 = vsel %vm95_vm0, %v453_v53, 0.0 }
 0x3d7   :  { %460 = vadd.xlane.f32.xlu2 %v459_v54 }
 0x442   :  { %v458_v62 = vpop.xlane.xlu0 %457 }
 0x443   :  { %v469_v63 = vmul.f32 %v1788_v5, %v458_v62 }
 0x445   :  { %v471_v0 = vsub.f32 %v452_v47, %v469_v63  ;;  %v548_v47 = vld [vmem:[#allocation7 + $0x98] sm:$0xff] }
 0x446   :  { %v553_v48 = vpack.c.bf16 %v548_v47, %v547_v46 }
 0x447   :  { %v473_v1 = vmul.f32 %v471_v0, %v471_v0 }
 0x448   :  { %564 = vmatpush.bf16.msrb.mxu3 %v553_v48 }
 0x449   :  { %v475_v6 = vsel %vm95_vm0, %v473_v1, 0.0 }
 0x44a   :  { %476 = vadd.xlane.f32.xlu1 %v475_v6  ;;  %v461_v2 = vpop.xlane.xlu2 %460 }
 0x44b   :  { %v470_v3 = vmul.f32 %v1788_v5, %v461_v2  ;;  %v1469_v2 = vld [vmem:[#allocation7 + $0xa3] ss:$0 sm:$0xff] }
 0x44c   :  { %565 = vmatpush.bf16.msrb.mxu3 %v552_v51 }
 0x44d   :  { %v472_v4 = vsub.f32 %v453_v53, %v470_v3  ;;  %v544_v53 = vld [vmem:[#allocation7 + $0x78] sm:$0xff] }
 0x44e   :  { %v551_v54 = vpack.c.bf16 %v544_v53, %v543_v52  ;;  %v1471_v53 = vld [vmem:[#allocation7 + $0xa7] ss:$0 sm:$0xff] }
 0x44f   :  { %v474_v7 = vmul.f32 %v472_v4, %v472_v4 }
 0x450   :  { %566 = vmatpush.bf16.msrb.mxu3 %v551_v54 }
 0x451   :  { %v478_v8 = vsel %vm95_vm0, %v474_v7, 0.0 }
 0x452   :  { %479 = vadd.xlane.f32.xlu0 %v478_v8 }
 0x454   :  { %567 = vmatpush.bf16.msrb.mxu3 %v550_v58 }
 0x4bd   :  { %v477_v13 = vpop.xlane.xlu1 %476 }
 0x4be   :  { %v481_v14 = vmul.f32 %v477_v13, %v1788_v5 }
 0x4c0   :  { %v483_v18 = vadd.f32 1e-05, %v481_v14 }
 0x4c2   :  { %1501 = vrsqrt.f32 %v483_v18  ;;  %vm491_vm10 = vweird.f32 %v483_v18 }
 0x4c5   :  { %v480_v20 = vpop.xlane.xlu0 %479 }
 0x4c6   :  { %v482_v21 = vmul.f32 %v480_v20, %v1788_v5 }
 0x4c8   :  { %v1502_v23 = vpop.eup %1501  ;;  %v484_v24 = vadd.f32 1e-05, %v482_v21 }
 0x4c9   :  { %v486_v26 = vmul.f32 %v1502_v23, %v483_v18  ;;  %vm492_vm9 = vweird.f32 %v1502_v23 }
 0x4ca   :  { %1503 = vrsqrt.f32 %v484_v24  ;;  %vm493_vm11 = vmor %vm491_vm10, %vm492_vm9  ;;  %vm501_vm13 = vweird.f32 %v484_v24 }
 0x4cb   :  { %v487_v27 = vmul.f32 %v1502_v23, %v486_v26 }
 0x4cd   :  { %v488_v29 = vmul.f32 0.5, %v487_v27  ;;  %v630_v27 = vld [vmem:[#allocation7 + $0xb8] sm:$0xff] }
 0x4cf   :  { %v489_v30 = vsub.f32 1.5, %v488_v29  ;;  %v631_v29 = vld [vmem:[#allocation7 + $0xc0] sm:$0xff] }
 0x4d0   :  { %v1504_v31 = vpop.eup %1503 }
 0x4d1   :  { %v490_v32 = vmul.f32 %v1502_v23, %v489_v30  ;;  %v496_v9 = vmul.f32 %v1504_v31, %v484_v24  ;;  %vm502_vm12 = vweird.f32 %v1504_v31  ;;  %v634_v30 = vpack.c.bf16 %v631_v29, %v630_v27 }
 0x4d2   :  { %vm503_vm14 = vmor %vm501_vm13, %vm502_vm12 }
 0x4d3   :  { %v497_v33 = vmul.f32 %v1504_v31, %v496_v9  ;;  %v494_v34 = vsel %vm493_vm11, %v1502_v23, %v490_v32  ;;  %646 = vmatpush.bf16.msrb.mxu0 %v634_v30  ;;  %v628_v9 = vld [vmem:[#allocation7 + $0xa8] sm:$0xff] }
 0x4d4   :  { %v505_v22 = vmul.f32 %v494_v34, %v471_v0 }
 0x4d5   :  { %v498_v25 = vmul.f32 0.5, %v497_v33  ;;  %v629_v33 = vld [vmem:[#allocation7 + $0xb0] sm:$0xff] }
 0x4d6   :  { %v508_v39 = vmul.f32 %v1466_v16, %v505_v22 }
 0x4d7   :  { %v499_v35 = vsub.f32 1.5, %v498_v25  ;;  %v633_v25 = vpack.c.bf16 %v629_v33, %v628_v9 }
 0x4d8   :  { %v511_v42 = vadd.f32 %v1467_v38, %v508_v39 }
 0x4d9   :  { %v500_v36 = vmul.f32 %v1504_v31, %v499_v35  ;;  %647 = vmatpush.bf16.msrb.mxu0 %v633_v25 }
 0x4db   :  { %v504_v37 = vsel %vm503_vm14, %v1504_v31, %v500_v36 }
 0x4dc   :  { %v506_v40 = vmul.f32 %v504_v37, %v472_v4 }
 0x4de   :  { %v509_v41 = vmul.f32 %v1466_v16, %v506_v40 }
 0x4e0   :  { %v512_v43 = vadd.f32 %v1467_v38, %v509_v41 }
 0x4e2   :  { %v517_v45 = vpack.c.bf16 %v512_v43, %v511_v42 }
 0x4e4   :  { %1425 = vmatmul.msk.bf16.vlgmr.msra.gmra.mxu2 %vm95_vm0, %v517_v45 }
 0x567   :  { %v534_v59 = vpop.f32.mrf.mxu2 }
 0x568   :  { %v535_v61 = vadd.f32 %v1468_v60, %v534_v59 }
 0x56a   :  { %v539_v0 = vmax.f32 %v535_v61, 0.0  ;;  %v1472_v61 = vld [vmem:[#allocation7 + $0x148] ss:$0 sm:$0xff] }
 0x56f   :  { %v536_v62 = vpop.f32.mrf.mxu2 }
 0x570   :  { %v537_v63 = vadd.f32 %v1468_v60, %v536_v62 }
 0x572   :  { %v540_v1 = vmax.f32 %v537_v63, 0.0 }
 0x574   :  { %v549_v6 = vpack.c.bf16 %v540_v1, %v539_v0 }
 0x576   :  { %1426 = vmatmul.msk.bf16.vlgmr.msrb.gmra.mxu3 %vm556_vm15, %v549_v6 }
 0x5f9   :  { %v569_v3 = vpop.f32.mrf.mxu3 }
 0x5fa   :  { %v570_v4 = vadd.f32 %v1469_v2, %v569_v3 }
 0x5fc   :  { %v574_v7 = vadd.f32 %v570_v4, %v511_v42 }
 0x5fe   :  { %v578_v8 = vsel %vm95_vm0, %v574_v7, 0.0 }
 0x5ff   :  { %579 = vadd.xlane.f32.xlu2 %v578_v8 }
 0x601   :  { %v571_v10 = vpop.f32.mrf.mxu3 }
 0x602   :  { %v572_v11 = vadd.f32 %v1469_v2, %v571_v10 }
 0x604   :  { %v575_v12 = vadd.f32 %v572_v11, %v512_v43 }
 0x606   :  { %v581_v13 = vsel %vm95_vm0, %v575_v12, 0.0 }
 0x607   :  { %582 = vadd.xlane.f32.xlu1 %v581_v13 }
 0x672   :  { %v580_v14 = vpop.xlane.xlu2 %579 }
 0x673   :  { %v584_v15 = vmul.f32 %v580_v14, %v1788_v5 }
 0x675   :  { %v586_v17 = vsub.f32 %v574_v7, %v584_v15 }
 0x677   :  { %v588_v18 = vmul.f32 %v586_v17, %v586_v17 }
 0x679   :  { %v590_v19 = vsel %vm95_vm0, %v588_v18, 0.0 }
 0x67a   :  { %v583_v20 = vpop.xlane.xlu1 %582  ;;  %591 = vadd.xlane.f32.xlu0 %v590_v19 }
 0x67b   :  { %v585_v21 = vmul.f32 %v583_v20, %v1788_v5 }
 0x67d   :  { %v587_v23 = vsub.f32 %v575_v12, %v585_v21 }
 0x67f   :  { %v589_v24 = vmul.f32 %v587_v23, %v587_v23 }
 0x681   :  { %v593_v26 = vsel %vm95_vm0, %v589_v24, 0.0 }
 0x682   :  { %594 = vadd.xlane.f32.xlu2 %v593_v26 }
 0x6ed   :  { %v592_v31 = vpop.xlane.xlu0 %591 }
 0x6ee   :  { %v596_v32 = vmul.f32 %v592_v31, %v1788_v5 }
 0x6f0   :  { %v598_v34 = vadd.f32 1e-05, %v596_v32 }
 0x6f2   :  { %1505 = vrsqrt.f32 %v598_v34  ;;  %vm606_vm5 = vweird.f32 %v598_v34 }
 0x6f5   :  { %v595_v35 = vpop.xlane.xlu2 %594 }
 0x6f6   :  { %v597_v16 = vmul.f32 %v595_v35, %v1788_v5 }
 0x6f8   :  { %v1506_v22 = vpop.eup %1505  ;;  %v599_v36 = vadd.f32 1e-05, %v597_v16 }
 0x6f9   :  { %v601_v37 = vmul.f32 %v1506_v22, %v598_v34  ;;  %vm607_vm4 = vweird.f32 %v1506_v22 }
 0x6fa   :  { %1507 = vrsqrt.f32 %v599_v36  ;;  %vm608_vm6 = vmor %vm606_vm5, %vm607_vm4  ;;  %vm616_vm8 = vweird.f32 %v599_v36 }
 0x6fb   :  { %v602_v38 = vmul.f32 %v1506_v22, %v601_v37 }
 0x6fd   :  { %v603_v39 = vmul.f32 0.5, %v602_v38 }
 0x6ff   :  { %v604_v40 = vsub.f32 1.5, %v603_v39 }
 0x700   :  { %v1508_v41 = vpop.eup %1507 }
 0x701   :  { %v605_v42 = vmul.f32 %v1506_v22, %v604_v40  ;;  %v611_v43 = vmul.f32 %v1508_v41, %v599_v36  ;;  %vm617_vm7 = vweird.f32 %v1508_v41 }
 0x702   :  { %vm618_vm9 = vmor %vm616_vm8, %vm617_vm7 }
 0x703   :  { %v612_v45 = vmul.f32 %v1508_v41, %v611_v43  ;;  %v609_v46 = vsel %vm608_vm6, %v1506_v22, %v605_v42 }
 0x704   :  { %v620_v50 = vmul.f32 %v609_v46, %v586_v17 }
 0x705   :  { %v613_v47 = vmul.f32 0.5, %v612_v45 }
 0x706   :  { %v623_v54 = vmul.f32 %v1470_v49, %v620_v50 }
 0x707   :  { %v614_v48 = vsub.f32 1.5, %v613_v47 }
 0x708   :  { %v1806_v58 = vadd.f32 %v1471_v53, %v623_v54 }
 0x709   :  { %v615_v51 = vmul.f32 %v1508_v41, %v614_v48 }
 0x70b   :  { %v619_v52 = vsel %vm618_vm9, %v1508_v41, %v615_v51 }
 0x70c   :  { %v621_v55 = vmul.f32 %v619_v52, %v587_v23 }
 0x70e   :  { %v624_v57 = vmul.f32 %v1470_v49, %v621_v55 }
 0x710   :  { %v1808_v59 = vadd.f32 %v1471_v53, %v624_v57 }
 0x712   :  { %v632_v60 = vpack.c.bf16 %v1808_v59, %v1806_v58 }
 0x714   :  { %1427 = vmatmul.msk.bf16.vlgmr.msrb.gmra.mxu0 %vm95_vm0, %v632_v60 }
 0x791   :  { %v649_v62 = vpop.f32.mrf.mxu0 }
 0x792   :  { %v650_v63 = vadd.f32 %v1472_v61, %v649_v62 }
 0x794   :  { %v658_v0 = vmul.f32 0.25, %v650_v63  ;;  %v662_v1 = vpack.c.bf16 %v650_v63, %v650_v63 }
 0x796   :  { %v665_v6 = vunpack.c.l.b16 %v662_v1  ;;  %v660_v2 = vpack.c.bf16 %v658_v0, %v658_v0 }
 0x798   :  { %v1813_v3 = vpack.c.b16 %v665_v6, %v665_v6  ;;  %v807_v11 = vunpack.c.l.b16 %v660_v2 }
 0x799   :  { %v651_v4 = vpop.f32.mrf.mxu0 }
 0x79a   :  { %v652_v7 = vadd.f32 %v1472_v61, %v651_v4  ;;  %811 = vrot.lane.b32.xlu2 %v1813_v3, %s1662_s0  ;;  %667 = vrot.lane.b32.xlu1 %v1813_v3, %s1663_s2  ;;  %v808_v15 = vpack.c.b16 %v807_v11, %v807_v11 }
 0x79c   :  { %v659_v8 = vmul.f32 0.25, %v652_v7  ;;  %v663_v10 = vpack.c.bf16 %v652_v7, %v652_v7 }
 0x79e   :  { %v661_v12 = vpack.c.bf16 %v659_v8, %v659_v8  ;;  %v689_v13 = vunpack.c.l.b16 %v663_v10 }
 0x7a0   :  { %v1819_v14 = vpack.c.b16 %v689_v13, %v689_v13  ;;  %v833_v17 = vunpack.c.l.b16 %v661_v12 }
 0x7a2   :  { %691 = vrot.lane.b32.xlu0 %v1819_v14, %s1663_s2  ;;  %809 = vrot.lane.b32.xlu1 %v808_v15, %s1664_s28  ;;  %v834_v18 = vpack.c.b16 %v833_v17, %v833_v17 }
 0x7a4   :  { %835 = vrot.lane.b32.xlu2 %v834_v18, %s1664_s28 }
 0x7aa   :  { %837 = vrot.lane.b32.xlu0 %v1819_v14, %s1662_s0 }
 0x7f4   :  { %v812_v19 = vpop.permute.xlu2 %811 }
 0x7f5   :  { %v817_v23 = vsel %vm128_vm1, %v812_v19, 0 }
 0x7fe   :  { %v836_v31 = vpop.permute.xlu2 %835 }
 0x80c   :  { %v668_v20 = vpop.permute.xlu1 %667 }
 0x80d   :  { %v673_v21 = vsel %vm128_vm1, %v668_v20, 0 }
 0x80e   :  { %682 = vmatpush.bf16.xpose.msrb.mxu1 %v673_v21 }
 0x814   :  { %v692_v24 = vpop.permute.xlu0 %691  ;;  %v810_v30 = vpop.permute.xlu1 %809 }
 0x815   :  { %v697_v26 = vsel %vm128_vm1, %v692_v24, 0  ;;  %1428 = vmatmul.msk.bf16.vlgmr.msrb.gmra.mxu1 %vm128_vm1, %v660_v2 }
 0x816   :  { %826 = vmatpush.bf16.xpose.msra.mxu1 %v817_v23  ;;  %706 = vmatpush.bf16.xpose.msrb.mxu2 %v697_v26 }
 0x81c   :  { %v838_v27 = vpop.permute.xlu0 %837 }
 0x81d   :  { %v843_v29 = vsel %vm128_vm1, %v838_v27, 0  ;;  %1429 = vmatmul.msk.bf16.vlgmr.msrb.gmra.mxu2 %vm128_vm1, %v661_v12 }
 0x81e   :  { %852 = vmatpush.bf16.xpose.msra.mxu2 %v843_v29 }
 0x825   :  { %1432 = vmatmul.msk.bf16.vlgmr.msra.gmra.mxu1 %vm128_vm1, %v810_v30 }
 0x82d   :  { %1433 = vmatmul.msk.bf16.vlgmr.msra.gmra.mxu2 %vm128_vm1, %v836_v31 }
 0x892   :  { %v684_v32 = vpop.f32.mrf.mxu1 }
 0x893   :  { %v685_v9 = vadd.f32 %v684_v32, %v1731_v44 }
 0x895   :  { %v712_v33 = vsel %vm172_vm2, %v685_v9, -inf }
 0x896   :  { %713 = vmax.xlane.f32.xlu0 %v712_v33 }
 0x89a   :  { %v686_v34 = vpop.f32.mrf.mxu1 }
 0x8a0   :  { %v708_v25 = vpop.f32.mrf.mxu2 }
 0x8a1   :  { %v709_v35 = vadd.f32 %v708_v25, %v1737_v56 }
 0x8a2   :  { %v828_v16 = vpop.f32.mrf.mxu1 }
 0x8a3   :  { %v829_v22 = vadd.f32 %v828_v16, %v1731_v44  ;;  %v715_v36 = vsel %vm172_vm2, %v709_v35, -inf }
 0x8a4   :  { %716 = vmax.xlane.f32.xlu1 %v715_v36 }
 0x8a5   :  { %v858_v37 = vsel %vm172_vm2, %v829_v22, -inf }
 0x8a6   :  { %859 = vmax.xlane.f32.xlu2 %v858_v37 }
 0x8a8   :  { %v710_v38 = vpop.f32.mrf.mxu2 }
 0x8aa   :  { %v830_v39 = vpop.f32.mrf.mxu1 }
 0x8b0   :  { %v854_v40 = vpop.f32.mrf.mxu2 }
 0x8b1   :  { %v855_v41 = vadd.f32 %v854_v40, %v1737_v56 }
 0x8b3   :  { %v861_v42 = vsel %vm172_vm2, %v855_v41, -inf }
 0x8b4   :  { %862 = vmax.xlane.f32.xlu0 %v861_v42 }
 0x8b8   :  { %v856_v43 = vpop.f32.mrf.mxu2 }
 0x8bd   :  { %762 = vrot.lane.b32.xlu1 %v1813_v3, %s1665_s29 }
 0x909   :  { %v714_v45 = vpop.xlane.xlu0 %713 }
 0x90a   :  { %v718_v44 = vsub.f32 %v685_v9, %v714_v45 }
 0x90c   :  { %v720_v46 = vmul.f32 1.442695, %v718_v44 }
 0x90e   :  { %1509 = vpow2.f32 %v720_v46 }
 0x914   :  { %v1510_v47 = vpop.eup %1509 }
 0x915   :  { %v724_v48 = vsel %vm172_vm2, %v1510_v47, 0.0 }
 0x916   :  { %725 = vadd.xlane.f32.xlu1 %v724_v48 }
 0x917   :  { %v717_v49 = vpop.xlane.xlu1 %716 }
 0x918   :  { %v719_v50 = vsub.f32 %v709_v35, %v717_v49 }
 0x919   :  { %v860_v51 = vpop.xlane.xlu2 %859 }
 0x91a   :  { %v722_v52 = vmul.f32 1.442695, %v719_v50  ;;  %v864_v56 = vsub.f32 %v829_v22, %v860_v51 }
 0x91c   :  { %1511 = vpow2.f32 %v722_v52  ;;  %v866_v53 = vmul.f32 1.442695, %v864_v56 }
 0x91e   :  { %1513 = vpow2.f32 %v866_v53 }
 0x922   :  { %v1846_v54 = vpop.eup %1511 }
 0x923   :  { %v727_v55 = vsel %vm172_vm2, %v1846_v54, 0.0 }
 0x924   :  { %v1850_v57 = vpop.eup %1513  ;;  %728 = vadd.xlane.f32.xlu2 %v727_v55 }
 0x925   :  { %v870_v60 = vsel %vm172_vm2, %v1850_v57, 0.0 }
 0x926   :  { %871 = vadd.xlane.f32.xlu0 %v870_v60 }
 0x927   :  { %v863_v61 = vpop.xlane.xlu0 %862 }
 0x928   :  { %v865_v62 = vsub.f32 %v855_v41, %v863_v61 }
 0x92a   :  { %v868_v63 = vmul.f32 1.442695, %v865_v62 }
 0x92c   :  { %1515 = vpow2.f32 %v868_v63 }
 0x92f   :  { %v763_v0 = vpop.permute.xlu1 %762  ;;  %929 = vrot.lane.b32.xlu1 %v1819_v14, %s1666_s30 }
 0x930   :  { %v768_v1 = vsel %vm228_vm3, %v763_v0, 0 }
 0x931   :  { %777 = vmatpush.bf16.msra.mxu3 %v768_v1 }
 0x932   :  { %v1857_v6 = vpop.eup %1515 }
 0x933   :  { %v873_v2 = vsel %vm172_vm2, %v1857_v6, 0.0 }
 0x934   :  { %874 = vadd.xlane.f32.xlu2 %v873_v2  ;;  %v654_v2 = vld [vmem:[#allocation7 + $0xc8] sm:$0xff] }
 0x93a   :  { %783 = vrot.lane.b32.xlu0 %v1819_v14, %s1665_s29 }
 0x94c   :  { %908 = vrot.lane.b32.xlu2 %v1813_v3, %s1666_s30 }
 0x989   :  { %v726_v4 = vpop.xlane.xlu1 %725 }
 0x98a   :  { %1517 = vrcp.f32 %v726_v4  ;;  %v741_v11 = vand.u32 2147483648, %v726_v4  ;;  %v739_v13 = vand.u32 2147483647, %v726_v4  ;;  %vm735_vm11 = vweird.f32 %v726_v4 }
 0x98c   :  { %v742_v18 = vor.u32 1.1754944e-38, %v741_v11  ;;  %vm740_vm13 = vcmp.eq.f32.partialorder %v739_v13, 8.507059e+37 }
 0x990   :  { %v1518_v7 = vpop.eup %1517 }
 0x991   :  { %v731_v8 = vmul.f32 %v1518_v7, %v726_v4  ;;  %vm736_vm10 = vweird.f32 %v1518_v7  ;;  %v655_v4 = vld [vmem:[#allocation7 + $0xd0] sm:$0xff] }
 0x992   :  { %vm737_vm12 = vmor %vm735_vm11, %vm736_vm10 }
 0x993   :  { %v732_v10 = vsub.f32 1.0, %v731_v8  ;;  %v656_v8 = vld [vmem:[#allocation7 + $0xd8] sm:$0xff] }
 0x995   :  { %v733_v12 = vmul.f32 %v1518_v7, %v732_v10  ;;  %v657_v10 = vld [vmem:[#allocation7 + $0xe0] sm:$0xff] }
 0x996   :  { %v951_v11 = vpack.c.bf16 %v657_v10, %v656_v8 }
 0x997   :  { %v734_v15 = vadd.f32 %v1518_v7, %v733_v12  ;;  %v729_v17 = vpop.xlane.xlu2 %728 }
 0x998   :  { %1519 = vrcp.f32 %v729_v17  ;;  %v756_v30 = vand.u32 2147483648, %v729_v17  ;;  %v754_v32 = vand.u32 2147483647, %v729_v17  ;;  %vm750_vm4 = vweird.f32 %v729_v17  ;;  %962 = vmatpush.bf16.msrb.mxu1 %v951_v11  ;;  %v1475_v11 = vld [vmem:[#allocation7 + $0x14d] ss:$0 sm:$0xff] }
 0x999   :  { %v738_v19 = vsel %vm737_vm12, %v1518_v7, %v734_v15  ;;  %v872_v14 = vpop.xlane.xlu0 %871  ;;  %v805_v7 = vpack.c.bf16 %v655_v4, %v654_v2  ;;  %v1474_v4 = vld [vmem:[#allocation7 + $0x14c] ss:$0 sm:$0xff] }
 0x99a   :  { %v743_v20 = vsel %vm740_vm13, %v742_v18, %v738_v19  ;;  %1521 = vrcp.f32 %v872_v14  ;;  %v887_v25 = vand.u32 2147483648, %v872_v14  ;;  %v757_v35 = vor.u32 1.1754944e-38, %v756_v30 }
 0x99b   :  { %v744_v3 = vmul.f32 %v1510_v47, %v743_v20  ;;  %v885_v16 = vand.u32 2147483647, %v872_v14  ;;  %vm755_vm7 = vcmp.eq.f32.partialorder %v754_v32, 8.507059e+37  ;;  %vm881_vm8 = vweird.f32 %v872_v14  ;;  %979 = vmatpush.bf16.msrb.mxu2 %v805_v7 }
 0x99c   :  { %v888_v40 = vor.u32 1.1754944e-38, %v887_v25 }
 0x99d   :  { %v760_v21 = vpack.c.bf16 %v744_v3, %v744_v3  ;;  %vm886_vm10 = vcmp.eq.f32.partialorder %v885_v16, 8.507059e+37 }
 0x99e   :  { %v1520_v23 = vpop.eup %1519 }
 0x99f   :  { %v746_v24 = vmul.f32 %v1520_v23, %v729_v17  ;;  %1430 = vmatmul.msk.bf16.vlgmr.msra.gmra.mxu3 %vm172_vm2, %v760_v21  ;;  %vm751_vm14 = vweird.f32 %v1520_v23 }
 0x9a0   :  { %v1522_v26 = vpop.eup %1521  ;;  %vm752_vm6 = vmor %vm750_vm4, %vm751_vm14 }
 0x9a1   :  { %v747_v27 = vsub.f32 1.0, %v746_v24  ;;  %v877_v29 = vmul.f32 %v1522_v26, %v872_v14  ;;  %vm882_vm5 = vweird.f32 %v1522_v26  ;;  %v930_v43 = vpop.permute.xlu1 %929 }
 0x9a2   :  { %vm883_vm9 = vmor %vm881_vm8, %vm882_vm5  ;;  %v935_v48 = vsel %vm228_vm3, %v930_v43, 0 }
 0x9a3   :  { %v748_v31 = vmul.f32 %v1520_v23, %v747_v27  ;;  %v878_v9 = vsub.f32 1.0, %v877_v29 }
 0x9a5   :  { %v749_v33 = vadd.f32 %v1520_v23, %v748_v31  ;;  %v879_v34 = vmul.f32 %v1522_v26, %v878_v9 }
 0x9a7   :  { %v753_v22 = vsel %vm752_vm6, %v1520_v23, %v749_v33  ;;  %v880_v36 = vadd.f32 %v1522_v26, %v879_v34  ;;  %v875_v37 = vpop.xlane.xlu2 %874  ;;  %v1473_v23 = vld [vmem:[#allocation7 + $0x149] ss:$0 sm:$0xff] }
 0x9a8   :  { %v758_v38 = vsel %vm755_vm7, %v757_v35, %v753_v22  ;;  %1523 = vrcp.f32 %v875_v37  ;;  %v902_v53 = vand.u32 2147483648, %v875_v37  ;;  %v900_v60 = vand.u32 2147483647, %v875_v37 }
 0x9a9   :  { %v884_v39 = vsel %vm883_vm9, %v1522_v26, %v880_v36  ;;  %v759_v41 = vmul.f32 %v1846_v54, %v758_v38  ;;  %vm896_vm12 = vweird.f32 %v875_v37 }
 0x9aa   :  { %v889_v42 = vsel %vm886_vm10, %v888_v40, %v884_v39  ;;  %v903_v61 = vor.u32 1.1754944e-38, %v902_v53  ;;  %vm901_vm14 = vcmp.eq.f32.partialorder %v900_v60, 8.507059e+37 }
 0x9ab   :  { %v890_v47 = vmul.f32 %v1850_v57, %v889_v42  ;;  %v761_v51 = vpack.c.bf16 %v759_v41, %v759_v41  ;;  %v1047_v42 = vld [vmem:[#allocation7 + $0x100] sm:$0xff] }
 0x9ac   :  { %v784_v45 = vpop.permute.xlu0 %783 }
 0x9ad   :  { %v789_v44 = vsel %vm228_vm3, %v784_v45, 0  ;;  %v906_v54 = vpack.c.bf16 %v890_v47, %v890_v47  ;;  %v1045_v47 = vld [vmem:[#allocation7 + $0xf0] sm:$0xff] }
 0x9ae   :  { %v1524_v46 = vpop.eup %1523  ;;  %798 = vmatpush.bf16.msra.mxu0 %v789_v44 }
 0x9af   :  { %v892_v49 = vmul.f32 %v1524_v46, %v875_v37  ;;  %v909_v50 = vpop.permute.xlu2 %908  ;;  %vm897_vm11 = vweird.f32 %v1524_v46 }
 0x9b0   :  { %v914_v52 = vsel %vm228_vm3, %v909_v50, 0  ;;  %vm898_vm13 = vmor %vm896_vm12, %vm897_vm11 }
 0x9b1   :  { %v893_v56 = vsub.f32 1.0, %v892_v49  ;;  %1431 = vmatmul.msk.bf16.vlgmr.msra.gmra.mxu0 %vm172_vm2, %v761_v51  ;;  %923 = vmatpush.bf16.msrb.mxu3 %v914_v52 }
 0x9b2   :  { %944 = vmatpush.bf16.msrb.mxu0 %v935_v48 }
 0x9b3   :  { %v894_v55 = vmul.f32 %v1524_v46, %v893_v56 }
 0x9b4   :  { %1434 = vmatmul.msk.bf16.vlgmr.msrb.gmra.mxu3 %vm172_vm2, %v906_v54 }
 0x9b5   :  { %v895_v57 = vadd.f32 %v1524_v46, %v894_v55 }
 0x9b7   :  { %v899_v62 = vsel %vm898_vm13, %v1524_v46, %v895_v57  ;;  %v1044_v46 = vld [vmem:[#allocation7 + $0xe8] sm:$0xff] }
 0x9b8   :  { %v904_v63 = vsel %vm901_vm14, %v903_v61, %v899_v62  ;;  %v1049_v49 = vpack.c.bf16 %v1045_v47, %v1044_v46 }
 0x9b9   :  { %v905_v0 = vmul.f32 %v1857_v6, %v904_v63 }
 0x9bb   :  { %v907_v1 = vpack.c.bf16 %v905_v0, %v905_v0 }
 0x9c1   :  { %1435 = vmatmul.msk.bf16.vlgmr.msrb.gmra.mxu0 %vm172_vm2, %v907_v1 }
 0xa22   :  { %v779_v12 = vpop.f32.mrf.mxu3 }
 0xa2a   :  { %v781_v13 = vpop.f32.mrf.mxu3 }
 0xa2e   :  { %v800_v15 = vpop.f32.mrf.mxu0 }
 0xa2f   :  { %v804_v17 = vpack.c.bf16 %v800_v15, %v779_v12 }
 0xa31   :  { %1437 = vmatmul.msk.bf16.vlgmr.msrb.gmra.mxu2 %vm128_vm1, %v804_v17 }
 0xa36   :  { %v802_v18 = vpop.f32.mrf.mxu0 }
 0xa37   :  { %v925_v19 = vpop.f32.mrf.mxu3 }
 0xa3e   :  { %v946_v6 = vpop.f32.mrf.mxu0 }
 0xa3f   :  { %v950_v14 = vpack.c.bf16 %v946_v6, %v925_v19  ;;  %v927_v20 = vpop.f32.mrf.mxu3  ;;  %v1078_v6 = vld [vmem:[#allocation7 + $0x138] sm:$0xff] }
 0xa41   :  { %1436 = vmatmul.msk.bf16.vlgmr.msrb.gmra.mxu1 %vm128_vm1, %v950_v14  ;;  %v1079_v14 = vld [vmem:[#allocation7 + $0x140] sm:$0xff] }
 0xa42   :  { %v1084_v20 = vpack.c.bf16 %v1079_v14, %v1078_v6 }
 0xa44   :  { %1094 = vmatpush.bf16.msra.mxu0 %v1084_v20 }
 0xa46   :  { %v948_v3 = vpop.f32.mrf.mxu0 }
 0xa47   :  { %v1076_v3 = vld [vmem:[#allocation7 + $0x128] sm:$0xff] }
 0xab4   :  { %v981_v21 = vpop.f32.mrf.mxu2 }
 0xabc   :  { %v983_v31 = vpop.f32.mrf.mxu2 }
 0xabe   :  { %v964_v24 = vpop.f32.mrf.mxu1 }
 0xabf   :  { %v982_v26 = vadd.f32 %v981_v21, %v964_v24  ;;  %v1077_v21 = vld [vmem:[#allocation7 + $0x130] sm:$0xff]  ;;  %v1074_v24 = vld [vmem:[#allocation7 + $0x118] sm:$0xff] }
 0xac1   :  { %v988_v27 = vadd.f32 %v1473_v23, %v982_v26  ;;  %v1075_v26 = vld [vmem:[#allocation7 + $0x120] sm:$0xff] }
 0xac3   :  { %v990_v29 = vadd.f32 %v988_v27, %v1806_v58  ;;  %v1082_v27 = vpack.c.bf16 %v1075_v26, %v1074_v24 }
 0xac5   :  { %v994_v30 = vsel %vm95_vm0, %v990_v29, 0.0 }
 0xac6   :  { %995 = vadd.xlane.f32.xlu0 %v994_v30  ;;  %v966_v32 = vpop.f32.mrf.mxu1  ;;  %v1073_v30 = vld [vmem:[#allocation7 + $0x110] sm:$0xff] }
 0xac7   :  { %v984_v9 = vadd.f32 %v983_v31, %v966_v32 }
 0xac9   :  { %v989_v33 = vadd.f32 %v1473_v23, %v984_v9  ;;  %v1083_v23 = vpack.c.bf16 %v1077_v21, %v1076_v3  ;;  %v1476_v9 = vld [vmem:[#allocation7 + $0x14a] ss:$0 sm:$0xff] }
 0xacb   :  { %v991_v34 = vadd.f32 %v989_v33, %v1808_v59  ;;  %v1046_v59 = vld [vmem:[#allocation7 + $0xf8] sm:$0xff]  ;;  %1095 = vmatpush.bf16.msra.mxu0 %v1083_v23 }
 0xacc   :  { %v1050_v43 = vpack.c.bf16 %v1047_v42, %v1046_v59 }
 0xacd   :  { %v997_v25 = vsel %vm95_vm0, %v991_v34, 0.0 }
 0xace   :  { %998 = vadd.xlane.f32.xlu1 %v997_v25  ;;  %1062 = vmatpush.bf16.msra.mxu3 %v1050_v43 }
 0xacf   :  { %1096 = vmatpush.bf16.msra.mxu0 %v1082_v27 }
 0xad2   :  { %1063 = vmatpush.bf16.msra.mxu3 %v1049_v49 }
 0xb39   :  { %v996_v35 = vpop.xlane.xlu0 %995 }
 0xb3a   :  { %v1000_v16 = vmul.f32 %v996_v35, %v1788_v5 }
 0xb3c   :  { %v1002_v22 = vsub.f32 %v990_v29, %v1000_v16  ;;  %v1072_v29 = vld [vmem:[#allocation7 + $0x108] sm:$0xff] }
 0xb3d   :  { %v1081_v31 = vpack.c.bf16 %v1073_v30, %v1072_v29 }
 0xb3e   :  { %v1004_v36 = vmul.f32 %v1002_v22, %v1002_v22 }
 0xb3f   :  { %1097 = vmatpush.bf16.msra.mxu0 %v1081_v31 }
 0xb40   :  { %v1006_v37 = vsel %vm95_vm0, %v1004_v36, 0.0  ;;  %v1477_v36 = vld [vmem:[#allocation7 + $0x14b] ss:$0 sm:$0xff] }
 0xb41   :  { %1007 = vadd.xlane.f32.xlu2 %v1006_v37  ;;  %v999_v58 = vpop.xlane.xlu1 %998 }
 0xb42   :  { %v1001_v38 = vmul.f32 %v999_v58, %v1788_v5 }
 0xb44   :  { %v1003_v39 = vsub.f32 %v991_v34, %v1001_v38 }
 0xb46   :  { %v1005_v40 = vmul.f32 %v1003_v39, %v1003_v39 }
 0xb48   :  { %v1009_v41 = vsel %vm95_vm0, %v1005_v40, 0.0 }
 0xb49   :  { %1010 = vadd.xlane.f32.xlu0 %v1009_v41 }
 0xbb4   :  { %v1008_v45 = vpop.xlane.xlu2 %1007 }
 0xbb5   :  { %v1012_v44 = vmul.f32 %v1008_v45, %v1788_v5 }
 0xbb7   :  { %v1014_v48 = vadd.f32 1e-05, %v1012_v44 }
 0xbb9   :  { %1525 = vrsqrt.f32 %v1014_v48  ;;  %vm1022_vm2 = vweird.f32 %v1014_v48 }
 0xbbc   :  { %v1011_v50 = vpop.xlane.xlu0 %1010 }
 0xbbd   :  { %v1013_v51 = vmul.f32 %v1011_v50, %v1788_v5 }
 0xbbf   :  { %v1526_v52 = vpop.eup %1525  ;;  %v1015_v56 = vadd.f32 1e-05, %v1013_v51 }
 0xbc0   :  { %v1017_v53 = vmul.f32 %v1526_v52, %v1014_v48  ;;  %vm1023_vm1 = vweird.f32 %v1526_v52 }
 0xbc1   :  { %1527 = vrsqrt.f32 %v1015_v56  ;;  %vm1024_vm3 = vmor %vm1022_vm2, %vm1023_vm1  ;;  %vm1032_vm5 = vweird.f32 %v1015_v56 }
 0xbc2   :  { %v1018_v54 = vmul.f32 %v1526_v52, %v1017_v53 }
 0xbc4   :  { %v1019_v55 = vmul.f32 0.5, %v1018_v54 }
 0xbc6   :  { %v1020_v60 = vsub.f32 1.5, %v1019_v55 }
 0xbc7   :  { %v1528_v57 = vpop.eup %1527 }
 0xbc8   :  { %v1021_v61 = vmul.f32 %v1526_v52, %v1020_v60  ;;  %v1027_v62 = vmul.f32 %v1528_v57, %v1015_v56  ;;  %vm1033_vm4 = vweird.f32 %v1528_v57 }
 0xbc9   :  { %vm1034_vm6 = vmor %vm1032_vm5, %vm1033_vm4 }
 0xbca   :  { %v1028_v63 = vmul.f32 %v1528_v57, %v1027_v62  ;;  %v1025_v0 = vsel %vm1024_vm3, %v1526_v52, %v1021_v61 }
 0xbcb   :  { %v1036_v7 = vmul.f32 %v1025_v0, %v1002_v22 }
 0xbcc   :  { %v1029_v1 = vmul.f32 0.5, %v1028_v63 }
 0xbcd   :  { %v1039_v12 = vmul.f32 %v1474_v4, %v1036_v7 }
 0xbce   :  { %v1030_v2 = vsub.f32 1.5, %v1029_v1 }
 0xbcf   :  { %v1042_v17 = vadd.f32 %v1475_v11, %v1039_v12 }
 0xbd0   :  { %v1031_v8 = vmul.f32 %v1528_v57, %v1030_v2 }
 0xbd2   :  { %v1035_v10 = vsel %vm1034_vm6, %v1528_v57, %v1031_v8  ;;  %v1478_v8 = vld [vmem:[#allocation7 + $0x14e] ss:$0 sm:$0xff] }
 0xbd3   :  { %v1037_v13 = vmul.f32 %v1035_v10, %v1003_v39 }
 0xbd5   :  { %v1040_v15 = vmul.f32 %v1474_v4, %v1037_v13  ;;  %v1479_v13 = vld [vmem:[#allocation7 + $0x14f] ss:$0 sm:$0xff] }
 0xbd7   :  { %v1043_v18 = vadd.f32 %v1475_v11, %v1040_v15 }
 0xbd9   :  { %v1048_v19 = vpack.c.bf16 %v1043_v18, %v1042_v17 }
 0xbdb   :  { %1438 = vmatmul.msk.bf16.vlgmr.msra.gmra.mxu3 %vm95_vm0, %v1048_v19 }
 0xc5e   :  { %v1065_v32 = vpop.f32.mrf.mxu3 }
 0xc5f   :  { %v1066_v33 = vadd.f32 %v1476_v9, %v1065_v32 }
 0xc61   :  { %v1070_v35 = vmax.f32 %v1066_v33, 0.0 }
 0xc66   :  { %v1067_v34 = vpop.f32.mrf.mxu3 }
 0xc67   :  { %v1068_v25 = vadd.f32 %v1476_v9, %v1067_v34 }
 0xc69   :  { %v1071_v16 = vmax.f32 %v1068_v25, 0.0 }
 0xc6b   :  { %v1080_v22 = vpack.c.bf16 %v1071_v16, %v1070_v35 }
 0xc6d   :  { %1439 = vmatmul.msk.bf16.vlgmr.msra.gmra.mxu0 %vm556_vm15, %v1080_v22 }
 0xcea   :  { %v1099_v37 = vpop.f32.mrf.mxu0 }
 0xceb   :  { %v1100_v58 = vadd.f32 %v1477_v36, %v1099_v37 }
 0xced   :  { %v1104_v38 = vadd.f32 %v1100_v58, %v1042_v17 }
 0xcef   :  { %v1108_v39 = vsel %vm95_vm0, %v1104_v38, 0.0 }
 0xcf0   :  { %1109 = vadd.xlane.f32.xlu1 %v1108_v39 }
 0xcf2   :  { %v1101_v40 = vpop.f32.mrf.mxu0 }
 0xcf3   :  { %v1102_v41 = vadd.f32 %v1477_v36, %v1101_v40 }
 0xcf5   :  { %v1105_v59 = vadd.f32 %v1102_v41, %v1043_v18 }
 0xcf7   :  { %v1111_v42 = vsel %vm95_vm0, %v1105_v59, 0.0 }
 0xcf8   :  { %1112 = vadd.xlane.f32.xlu0 %v1111_v42 }
 0xd63   :  { %v1110_v43 = vpop.xlane.xlu1 %1109 }
 0xd64   :  { %v1114_v45 = vmul.f32 %v1110_v43, %v1788_v5 }
 0xd66   :  { %v1116_v44 = vsub.f32 %v1104_v38, %v1114_v45 }
 0xd68   :  { %v1118_v46 = vmul.f32 %v1116_v44, %v1116_v44 }
 0xd6a   :  { %v1120_v47 = vsel %vm95_vm0, %v1118_v46, 0.0 }
 0xd6b   :  { %v1113_v48 = vpop.xlane.xlu0 %1112  ;;  %1121 = vadd.xlane.f32.xlu2 %v1120_v47 }
 0xd6c   :  { %v1115_v49 = vmul.f32 %v1113_v48, %v1788_v5 }
 0xd6e   :  { %v1117_v50 = vsub.f32 %v1105_v59, %v1115_v49  ;;  %v1907_v49 = vld [vmem:[#allocation7 + $0x151] ss:$0 sm:$0xff] }
 0xd70   :  { %v1119_v51 = vmul.f32 %v1117_v50, %v1117_v50 }
 0xd72   :  { %v1123_v52 = vsel %vm95_vm0, %v1119_v51, 0.0 }
 0xd73   :  { %1124 = vadd.xlane.f32.xlu1 %v1123_v52 }
 0xdde   :  { %v1122_v56 = vpop.xlane.xlu2 %1121 }
 0xddf   :  { %v1126_v53 = vmul.f32 %v1122_v56, %v1788_v5 }
 0xde1   :  { %v1128_v54 = vadd.f32 1e-05, %v1126_v53 }
 0xde3   :  { %1529 = vrsqrt.f32 %v1128_v54  ;;  %vm1136_vm7 = vweird.f32 %v1128_v54 }
 0xde6   :  { %v1125_v55 = vpop.xlane.xlu1 %1124 }
 0xde7   :  { %v1127_v60 = vmul.f32 %v1125_v55, %v1788_v5 }
 0xde9   :  { %v1530_v57 = vpop.eup %1529  ;;  %v1129_v61 = vadd.f32 1e-05, %v1127_v60 }
 0xdea   :  { %v1131_v62 = vmul.f32 %v1530_v57, %v1128_v54  ;;  %vm1137_vm15 = vweird.f32 %v1530_v57 }
 0xdeb   :  { %1531 = vrsqrt.f32 %v1129_v61  ;;  %vm1138_vm8 = vmor %vm1136_vm7, %vm1137_vm15  ;;  %vm1146_vm10 = vweird.f32 %v1129_v61 }
 0xdec   :  { %v1132_v63 = vmul.f32 %v1530_v57, %v1131_v62 }
 0xdee   :  { %v1133_v0 = vmul.f32 0.5, %v1132_v63 }
 0xdf0   :  { %v1134_v1 = vsub.f32 1.5, %v1133_v0 }
 0xdf1   :  { %v1532_v2 = vpop.eup %1531 }
 0xdf2   :  { %v1135_v4 = vmul.f32 %v1530_v57, %v1134_v1  ;;  %v1141_v7 = vmul.f32 %v1532_v2, %v1129_v61  ;;  %vm1147_vm9 = vweird.f32 %v1532_v2 }
 0xdf3   :  { %vm1148_vm11 = vmor %vm1146_vm10, %vm1147_vm9  ;;  %vm1281_vm9 = vcmask 1041409   ;;  %vm1284_vm10 = vcmask 58368  }
 0xdf4   :  { %v1142_v10 = vmul.f32 %v1532_v2, %v1141_v7  ;;  %v1139_v11 = vsel %vm1138_vm8, %v1530_v57, %v1135_v4 }
 0xdf5   :  { %v1150_v12 = vmul.f32 %v1139_v11, %v1116_v44  ;;  %v1905_v44 = vld [vmem:[#allocation7 + $0x150] ss:$0 sm:$0xff] }
 0xdf6   :  { %v1143_v15 = vmul.f32 0.5, %v1142_v10 }
 0xdf7   :  { %v1153_v17 = vmul.f32 %v1478_v8, %v1150_v12 }
 0xdf8   :  { %v1144_v18 = vsub.f32 1.5, %v1143_v15 }
 0xdf9   :  { %v1156_v19 = vadd.f32 %v1479_v13, %v1153_v17 }
 0xdfa   :  { %v1145_v6 = vmul.f32 %v1532_v2, %v1144_v18 }
 0xdfb   :  { %v1160_v14 = vsel %vm95_vm0, %v1156_v19, 0.0 }
 0xdfc   :  { %1161 = vadd.xlane.f32.xlu0 %v1160_v14  ;;  %v1149_v20 = vsel %vm1148_vm11, %v1532_v2, %v1145_v6 }
 0xdfd   :  { %v1151_v3 = vmul.f32 %v1149_v20, %v1117_v50 }
 0xdff   :  { %v1154_v21 = vmul.f32 %v1478_v8, %v1151_v3 }
 0xe01   :  { %v1157_v23 = vadd.f32 %v1479_v13, %v1154_v21 }
 0xe03   :  { %v1163_v24 = vsel %vm95_vm0, %v1157_v23, 0.0 }
 0xe04   :  { %1164 = vadd.xlane.f32.xlu2 %v1163_v24 }
 0xe6f   :  { %v1162_v26 = vpop.xlane.xlu0 %1161 }
 0xe70   :  { %v1166_v27 = vmul.f32 %v1162_v26, %v1788_v5 }
 0xe72   :  { %v1168_v29 = vsub.f32 %v1156_v19, %v1166_v27  ;;  %v1259_v19 = vld [vmem:[#allocation7 + $0x153] sm:$0x1] }
 0xe73   :  { %1442 = vpush %v1259_v19 }
 0xe74   :  { %v1170_v30 = vmul.f32 %v1168_v29, %v1168_v29 }
 0xe76   :  { %v1172_v31 = vsel %vm95_vm0, %v1170_v30, 0.0 }
 0xe77   :  { %1173 = vadd.xlane.f32.xlu1 %v1172_v31  ;;  %v1165_v32 = vpop.xlane.xlu2 %1164 }
 0xe78   :  { %v1167_v9 = vmul.f32 %v1165_v32, %v1788_v5 }
 0xe7a   :  { %v1169_v33 = vsub.f32 %v1157_v23, %v1167_v9 }
 0xe7c   :  { %v1171_v34 = vmul.f32 %v1169_v33, %v1169_v33 }
 0xe7e   :  { %v1175_v25 = vsel %vm95_vm0, %v1171_v34, 0.0 }
 0xe7f   :  { %1176 = vadd.xlane.f32.xlu0 %v1175_v25 }
 0xea4   :  { %s1443_s4 = spop %1442 }
 0xeea   :  { %v1174_v35 = vpop.xlane.xlu1 %1173 }
 0xeeb   :  { %v1178_v16 = vmul.f32 %v1174_v35, %v1788_v5 }
 0xeed   :  { %v1180_v22 = vadd.f32 1e-05, %v1178_v16 }
 0xeef   :  { %1533 = vrsqrt.f32 %v1180_v22  ;;  %vm1188_vm13 = vweird.f32 %v1180_v22 }
 0xef2   :  { %v1177_v36 = vpop.xlane.xlu0 %1176 }
 0xef3   :  { %v1179_v37 = vmul.f32 %v1177_v36, %v1788_v5 }
 0xef5   :  { %v1534_v58 = vpop.eup %1533  ;;  %v1181_v38 = vadd.f32 1e-05, %v1179_v37 }
 0xef6   :  { %v1183_v39 = vmul.f32 %v1534_v58, %v1180_v22  ;;  %vm1189_vm12 = vweird.f32 %v1534_v58 }
 0xef7   :  { %1535 = vrsqrt.f32 %v1181_v38  ;;  %vm1190_vm14 = vmor %vm1188_vm13, %vm1189_vm12  ;;  %vm1198_vm2 = vweird.f32 %v1181_v38 }
 0xef8   :  { %v1184_v40 = vmul.f32 %v1534_v58, %v1183_v39 }
 0xefa   :  { %v1185_v41 = vmul.f32 0.5, %v1184_v40 }
 0xefc   :  { %v1186_v59 = vsub.f32 1.5, %v1185_v41  ;;  %v1271_v41 = vstv %s1443_s4 }
 0xefd   :  { %v1536_v42 = vpop.eup %1535 }
 0xefe   :  { %v1187_v43 = vmul.f32 %v1534_v58, %v1186_v59  ;;  %v1193_v45 = vmul.f32 %v1536_v42, %v1181_v38  ;;  %vm1199_vm1 = vweird.f32 %v1536_v42 }
 0xeff   :  { %vm1200_vm3 = vmor %vm1198_vm2, %vm1199_vm1 }
 0xf00   :  { %v1194_v46 = vmul.f32 %v1536_v42, %v1193_v45  ;;  %v1191_v47 = vsel %vm1190_vm14, %v1534_v58, %v1187_v43 }
 0xf01   :  { %v1202_v48 = vmul.f32 %v1191_v47, %v1168_v29 }
 0xf02   :  { %v1195_v50 = vmul.f32 0.5, %v1194_v46 }
 0xf03   :  { %v1205_v51 = vmul.f32 %v1905_v44, %v1202_v48 }
 0xf04   :  { %v1196_v52 = vsub.f32 1.5, %v1195_v50  ;;  %v1668_v50 = vmov 8.0  }
 0xf05   :  { %v1208_v56 = vadd.f32 %v1907_v49, %v1205_v51  ;;  %v1669_v51 = vmov 0  }
 0xf06   :  { %v1197_v53 = vmul.f32 %v1536_v42, %v1196_v52  ;;  %1461 = vset.pattern.permute.xlu1 %v1669_v51  ;;  %1462 = vset.pattern.permute.xlu0 %v1669_v51 }
 0xf07   :  { %v1210_v54 = vsel %vm95_vm0, %v1208_v56, 0.0  ;;  %1463 = vset.pattern.permute.xlu2 %v1669_v51 }
 0xf08   :  { %1211 = vadd.xlane.f32.xlu2 %v1210_v54  ;;  %v1201_v55 = vsel %vm1200_vm3, %v1536_v42, %v1197_v53  ;;  %v1928_v42 = vand.u32 127, %v65_v28 }
 0xf09   :  { %v1203_v60 = vmul.f32 %v1201_v55, %v1169_v33  ;;  %v1482_v33 = vld [vmem:[#allocation7 + $0x152] ss:$0 sm:$0xff] }
 0xf0b   :  { %v1206_v57 = vmul.f32 %v1905_v44, %v1203_v60 }
 0xf0d   :  { %v1209_v61 = vadd.f32 %v1907_v49, %v1206_v57 }
 0xf0f   :  { %v1213_v62 = vsel %vm95_vm0, %v1209_v61, 0.0 }
 0xf10   :  { %1214 = vadd.xlane.f32.xlu1 %v1213_v62 }
 0xf7b   :  { %v1212_v63 = vpop.xlane.xlu2 %1211 }
 0xf7c   :  { %v1216_v0 = vmul.f32 %v1212_v63, %v1788_v5 }
 0xf7e   :  { %v1218_v1 = vsub.f32 %v1208_v56, %v1216_v0 }
 0xf80   :  { %v1220_v2 = vmul.f32 %v1218_v1, %v1218_v1 }
 0xf82   :  { %v1222_v4 = vsel %vm95_vm0, %v1220_v2, 0.0 }
 0xf83   :  { %1223 = vadd.xlane.f32.xlu0 %v1222_v4  ;;  %v1215_v7 = vpop.xlane.xlu1 %1214 }
 0xf84   :  { %v1217_v8 = vmul.f32 %v1215_v7, %v1788_v5 }
 0xf86   :  { %v1219_v10 = vsub.f32 %v1209_v61, %v1217_v8 }
 0xf88   :  { %v1221_v11 = vmul.f32 %v1219_v10, %v1219_v10 }
 0xf8a   :  { %v1225_v12 = vsel %vm95_vm0, %v1221_v11, 0.0 }
 0xf8b   :  { %1226 = vadd.xlane.f32.xlu2 %v1225_v12 }
 0xff6   :  { %v1224_v13 = vpop.xlane.xlu0 %1223 }
 0xff7   :  { %v1228_v15 = vmul.f32 %v1224_v13, %v1788_v5  ;;  %v1670_v13 = vmov 7.0  }
 0xff9   :  { %v1230_v17 = vadd.f32 1e-05, %v1228_v15 }
 0xffb   :  { %1537 = vrsqrt.f32 %v1230_v17  ;;  %vm1238_vm5 = vweird.f32 %v1230_v17 }
 0xffe   :  { %v1227_v18 = vpop.xlane.xlu2 %1226 }
 0xfff   :  { %v1229_v6 = vmul.f32 %v1227_v18, %v1788_v5 }
0x1001   :  { %v1538_v14 = vpop.eup %1537  ;;  %v1231_v20 = vadd.f32 1e-05, %v1229_v6 }
0x1002   :  { %v1233_v3 = vmul.f32 %v1538_v14, %v1230_v17  ;;  %vm1239_vm4 = vweird.f32 %v1538_v14 }
0x1003   :  { %1539 = vrsqrt.f32 %v1231_v20  ;;  %vm1240_vm6 = vmor %vm1238_vm5, %vm1239_vm4  ;;  %vm1248_vm7 = vweird.f32 %v1231_v20 }
0x1004   :  { %v1234_v21 = vmul.f32 %v1538_v14, %v1233_v3  ;;  %1541 = vrcp.f32 %v1668_v50 }
0x1005   :  { %1543 = vrcp.f32 %v1670_v13 }
0x1006   :  { %v1235_v23 = vmul.f32 0.5, %v1234_v21 }
0x1008   :  { %v1236_v24 = vsub.f32 1.5, %v1235_v23 }
0x1009   :  { %v1540_v26 = vpop.eup %1539 }
0x100a   :  { %v1237_v27 = vmul.f32 %v1538_v14, %v1236_v24  ;;  %v1243_v29 = vmul.f32 %v1540_v26, %v1231_v20  ;;  %vm1249_vm15 = vweird.f32 %v1540_v26  ;;  %v1542_v28 = vpop.eup %1541 }
0x100b   :  { %vm1250_vm8 = vmor %vm1248_vm7, %vm1249_vm15  ;;  %v1289_v52 = vmul.f32 8.0, %v1542_v28  ;;  %v1544_v15 = vpop.eup %1543 }
0x100c   :  { %v1241_v30 = vsel %vm1240_vm6, %v1538_v14, %v1237_v27  ;;  %v1244_v31 = vmul.f32 %v1540_v26, %v1243_v29  ;;  %v1321_v17 = vmul.f32 7.0, %v1544_v15  ;;  %vm1325_vm11 = vweird.f32 %v1544_v15 }
0x100d   :  { %v1252_v32 = vmul.f32 %v1241_v30, %v1218_v1  ;;  %v1290_v56 = vsub.f32 1.0, %v1289_v52 }
0x100e   :  { %v1245_v9 = vmul.f32 0.5, %v1244_v31  ;;  %v1322_v18 = vsub.f32 1.0, %v1321_v17 }
0x100f   :  { %v1254_v5 = vmul.f32 %v1905_v44, %v1252_v32  ;;  %v1291_v53 = vmul.f32 %v1542_v28, %v1290_v56 }
0x1010   :  { %v1246_v34 = vsub.f32 1.5, %v1245_v9  ;;  %v1323_v19 = vmul.f32 %v1544_v15, %v1322_v18 }
0x1011   :  { %v1256_v25 = vadd.f32 %v1907_v49, %v1254_v5  ;;  %v1292_v54 = vadd.f32 %v1542_v28, %v1291_v53 }
0x1012   :  { %v1247_v35 = vmul.f32 %v1540_v26, %v1246_v34  ;;  %v1324_v6 = vadd.f32 %v1544_v15, %v1323_v19 }
0x1013   :  { %v1261_v16 = vmul.f32 %v1482_v33, %v1256_v25 }
0x1014   :  { %v1251_v22 = vsel %vm1250_vm8, %v1540_v26, %v1247_v35  ;;  %v1326_v14 = vsel %vm1325_vm11, %v1544_v15, %v1324_v6 }
0x1015   :  { %v1263_v36 = vsel %vm95_vm0, %v1261_v16, 0.0  ;;  %v1253_v37 = vmul.f32 %v1251_v22, %v1219_v10 }
0x1016   :  { %1264 = vadd.xlane.f32.xlu1 %v1263_v36 }
0x1017   :  { %v1255_v58 = vmul.f32 %v1905_v44, %v1253_v37 }
0x1019   :  { %v1257_v38 = vadd.f32 %v1907_v49, %v1255_v58 }
0x101b   :  { %v1262_v39 = vmul.f32 %v1482_v33, %v1257_v38 }
0x101d   :  { %v1266_v40 = vsel %vm95_vm0, %v1262_v39, 0.0  ;;  %vm1293_vm0 = vweird.f32 %v1542_v28 }
0x101e   :  { %1267 = vadd.xlane.f32.xlu0 %v1266_v40  ;;  %v1294_v55 = vsel %vm1293_vm0, %v1542_v28, %v1292_v54 }
0x1089   :  { %v1265_v59 = vpop.xlane.xlu1 %1264 }
0x108a   :  { %v1273_v43 = vadd.f32 %v1271_v41, %v1265_v59 }
0x108c   :  { %v1279_v47 = vperm.slane %v1273_v43, %v1928_v42 }
0x1091   :  { %v1268_v45 = vpop.xlane.xlu0 %1267 }
0x1092   :  { %v1274_v46 = vadd.f32 %v1271_v41, %v1268_v45 }
0x1094   :  { %v1280_v44 = vperm.slane %v1274_v46, %v1928_v42 }
0x1096   :  { %v1282_v48 = vsel %vm1281_vm9, %v1280_v44, %v1279_v47 }
0x1097   :  { %v1285_v49 = vsel %vm1284_vm10, %v1282_v48, 0.0 }
0x1098   :  { %1286 = vadd.xlane.f32.xlu2 %v1285_v49 }
0x110b   :  { %v1287_v60 = vpop.xlane.xlu2 %1286 }
0x110c   :  { %v1295_v57 = vmul.f32 %v1294_v55, %v1287_v60 }
0x110e   :  { %v1297_v61 = vperm.slane %v1295_v57, 0  ;;  %v1298_v62 = vperm.slane %v1295_v57, 1 }
0x1110   :  { %v1301_v63 = vsub.f32 %v1273_v43, %v1297_v61  ;;  %v1302_v0 = vsub.f32 %v1274_v46, %v1298_v62 }
0x1112   :  { %v1304_v1 = vmul.f32 %v1302_v0, %v1302_v0  ;;  %v1303_v2 = vmul.f32 %v1301_v63, %v1301_v63 }
0x1114   :  { %1311 = vperm.xlu0 %1462, %v1304_v1   ;;  %1308 = vperm.xlu1 %1461, %v1303_v2  }
0x1186   :  { %v1312_v4 = vpop.permute.xlu0 %1311  ;;  %v1309_v7 = vpop.permute.xlu1 %1308 }
0x1187   :  { %v1314_v8 = vperm.slane %v1312_v4, %v1928_v42  ;;  %v1313_v10 = vperm.slane %v1309_v7, %v1928_v42 }
0x1189   :  { %v1315_v11 = vsel %vm1281_vm9, %v1314_v8, %v1313_v10 }
0x118a   :  { %v1317_v12 = vsel %vm1284_vm10, %v1315_v11, 0.0 }
0x118b   :  { %1318 = vadd.xlane.f32.xlu2 %v1317_v12 }
0x11fe   :  { %v1319_v20 = vpop.xlane.xlu2 %1318 }
0x11ff   :  { %v1327_v3 = vmul.f32 %v1326_v14, %v1319_v20 }
0x1201   :  { %1545 = vrsqrt.f32 %v1327_v3  ;;  %vm1334_vm13 = vweird.f32 %v1327_v3 }
0x1207   :  { %v1546_v21 = vpop.eup %1545 }
0x1208   :  { %v1329_v23 = vmul.f32 %v1546_v21, %v1327_v3  ;;  %vm1335_vm12 = vweird.f32 %v1546_v21 }
0x1209   :  { %vm1336_vm14 = vmor %vm1334_vm13, %vm1335_vm12 }
0x120a   :  { %v1330_v24 = vmul.f32 %v1546_v21, %v1329_v23 }
0x120c   :  { %v1331_v26 = vmul.f32 0.5, %v1330_v24 }
0x120e   :  { %v1332_v27 = vsub.f32 1.5, %v1331_v26 }
0x1210   :  { %v1333_v29 = vmul.f32 %v1546_v21, %v1332_v27 }
0x1212   :  { %v1337_v30 = vsel %vm1336_vm14, %v1546_v21, %v1333_v29 }
0x1213   :  { %v1339_v31 = vperm.slane %v1337_v30, 0  ;;  %v1340_v32 = vperm.slane %v1337_v30, 1 }
0x1215   :  { %v1343_v9 = vmul.f32 %v1339_v31, %v1301_v63  ;;  %v1344_v5 = vmul.f32 %v1340_v32, %v1302_v0 }
0x1217   :  { %v1440_v33 = vmul.f32 -1.442695, %v1343_v9  ;;  %v1441_v34 = vmul.f32 -1.442695, %v1344_v5 }
0x1219   :  { %1547 = vpow2.f32 %v1440_v33 }
0x121a   :  { %1549 = vpow2.f32 %v1441_v34 }
0x121f   :  { %v1548_v25 = vpop.eup %1547 }
0x1220   :  { %v1550_v35 = vpop.eup %1549  ;;  %v1351_v16 = vadd.f32 1.0, %v1548_v25 }
0x1221   :  { %v1352_v22 = vadd.f32 1.0, %v1550_v35 }
0x1222   :  { %1551 = vrcp.f32 %v1351_v16  ;;  %v1364_v41 = vand.u32 2147483648, %v1351_v16  ;;  %v1362_v45 = vand.u32 2147483647, %v1351_v16  ;;  %vm1358_vm3 = vweird.f32 %v1351_v16 }
0x1223   :  { %1553 = vrcp.f32 %v1352_v22  ;;  %v1379_v59 = vand.u32 2147483648, %v1352_v22  ;;  %v1377_v47 = vand.u32 2147483647, %v1352_v22  ;;  %vm1373_vm4 = vweird.f32 %v1352_v22 }
0x1224   :  { %v1365_v49 = vor.u32 1.1754944e-38, %v1364_v41  ;;  %vm1363_vm15 = vcmp.eq.f32.partialorder %v1362_v45, 8.507059e+37 }
0x1225   :  { %v1380_v50 = vor.u32 1.1754944e-38, %v1379_v59  ;;  %vm1378_vm7 = vcmp.eq.f32.partialorder %v1377_v47, 8.507059e+37 }
0x1228   :  { %v1552_v36 = vpop.eup %1551 }
0x1229   :  { %v1554_v37 = vpop.eup %1553  ;;  %v1354_v58 = vmul.f32 %v1552_v36, %v1351_v16  ;;  %vm1359_vm1 = vweird.f32 %v1552_v36 }
0x122a   :  { %v1369_v38 = vmul.f32 %v1554_v37, %v1352_v22  ;;  %vm1374_vm2 = vweird.f32 %v1554_v37  ;;  %vm1360_vm5 = vmor %vm1358_vm3, %vm1359_vm1 }
0x122b   :  { %v1355_v39 = vsub.f32 1.0, %v1354_v58  ;;  %vm1375_vm6 = vmor %vm1373_vm4, %vm1374_vm2 }
0x122c   :  { %v1370_v40 = vsub.f32 1.0, %v1369_v38 }
0x122d   :  { %v1356_v43 = vmul.f32 %v1552_v36, %v1355_v39 }
0x122e   :  { %v1371_v46 = vmul.f32 %v1554_v37, %v1370_v40 }
0x122f   :  { %v1357_v44 = vadd.f32 %v1552_v36, %v1356_v43 }
0x1230   :  { %v1372_v48 = vadd.f32 %v1554_v37, %v1371_v46 }
0x1231   :  { %v1361_v51 = vsel %vm1360_vm5, %v1552_v36, %v1357_v44 }
0x1232   :  { %v1376_v28 = vsel %vm1375_vm6, %v1554_v37, %v1372_v48  ;;  %v1366_v52 = vsel %vm1363_vm15, %v1365_v49, %v1361_v51 }
0x1233   :  { %v1381_v56 = vsel %vm1378_vm7, %v1380_v50, %v1376_v28  ;;  %1386 = vperm.xlu2 %1463, %v1366_v52  }
0x1234   :  { %1389 = vperm.xlu1 %1461, %v1381_v56  }
0x128d   :  { %v1387_v53 = vpop.permute.xlu2 %1386 }
0x128e   :  { %v1391_v55 = vperm.slane %v1387_v53, %v1928_v42 }
0x12a6   :  { %v1390_v54 = vpop.permute.xlu1 %1389 }
0x12a7   :  { %v1392_v60 = vperm.slane %v1390_v54, %v1928_v42 }
0x12a9   :  { %v1393_v57 = vsel %vm1281_vm9, %v1392_v60, %v1391_v55 }
0x12aa   :  { %1395 = vst.msk [vmem:[#allocation8] sm:$0x3] %vm1284_vm10, %v1393_v57 }
0x12ab   :  { %1406 = dma.vmem_to_hbm [thread:$0]  %s1402_s6, 32, %s1404_s9, [#allocation4]  }
0x12ac   :  { %1655 = dma.done.wait [#allocation4], 32  }
0x12ad   :  { %1656 = vsyncadd [#allocation4], 4294967264 }
0x12ae   :  { %1411 = vsyncpa [#allocation3], 1 }
0x12af   :  { %1412 = vsyncpa [#allocation6], 1 }
0x12b0   :  { %1413 = vsyncpa [#allocation4], 1 }

</bundles_post_ra>
